<compile_context>
chip_gen: v7x
topology: tpu7x:2x2x1
jax: 0.10.0
libtpu: 0.0.40
codegen_flags: <defaults>
</compile_context>

<pallas_src>
import functools

import jax
import jax.numpy as jnp
from jax.experimental import pallas as pl
from jax.experimental.pallas import tpu as pltpu

BN_EPS = 1e-5
LRELU_SLOPE = 0.2


def _round_up(a, b):
    return (a + b - 1) // b * b


def _vmem_capacity_bytes():
    """Physical VMEM of the current TPU generation, conservative fallback otherwise."""
    try:
        info = pltpu.get_tpu_info()
        cap = getattr(info, "vmem_capacity_bytes", None)
        if cap:
            return int(cap)
    except Exception:
        pass
    return 64 * 1024 * 1024   # v7x per-TensorCore VMEM (smallest of v5e/v6e/v7x)


def _disc_kernel(x_ref, w1_ref, gamma_ref, beta_ref, w2_ref, o_ref,
                 sum_ref, sumsq_ref, scale_ref, shift_ref, z_ref=None,
                 *, n_rows, stash_z):
    p = pl.program_id(0)      # 0 = batch-statistics pass, 1 = normalize/apply pass
    i = pl.program_id(1)      # batch tile
    nt = pl.num_programs(1)

    @pl.when(p == 0)
    def _stats_pass():
        # body.block1 Linear; bias dropped (cancels exactly under training-mode BN).
        # f32 accumulation on the MXU even if x is bf16.
        z = jnp.dot(x_ref[...], w1_ref[...], preferred_element_type=jnp.float32)
        if stash_z:
            z_ref[i] = z      # keep z resident in VMEM: no second HBM read of x

        @pl.when(i == 0)
        def _init():
            sum_ref[...] = jnp.zeros_like(sum_ref)
            sumsq_ref[...] = jnp.zeros_like(sumsq_ref)

        # Zero-padded batch rows give z == 0 exactly (no bias), so they contribute
        # nothing here; dividing by the true n_rows keeps the statistics exact.
        sum_ref[...] += jnp.sum(z, axis=0, keepdims=True)
        sumsq_ref[...] += jnp.sum(z * z, axis=0, keepdims=True)

        @pl.when(i == nt - 1)
        def _fold_bn():
            inv_n = jnp.float32(1.0 / n_rows)
            mean = sum_ref[...] * inv_n
            # TODO(synk): E[z^2]-E[z]^2 cancels badly if |mean| >> std; switch to
            # per-tile centered (Welford-style) stats for such activations.
            var = sumsq_ref[...] * inv_n - mean * mean
            scale = gamma_ref[...] * jax.lax.rsqrt(var + BN_EPS)
            scale_ref[...] = scale
            shift_ref[...] = beta_ref[...] - mean * scale

    @pl.when(p == 1)
    def _apply_pass():
        if stash_z:
            z = z_ref[i]
        else:
            z = jnp.dot(x_ref[...], w1_ref[...], preferred_element_type=jnp.float32)
        zh = z * scale_ref[...] + shift_ref[...]          # fused BatchNorm
        h = jnp.where(zh >= 0, zh, LRELU_SLOPE * zh)      # LeakyReLU(0.2)
        # tail Linear(hidden, 1, bias=False): (1,H) x (TN,H) contracted over H on the
        # (otherwise idle) MXU -> lane-dense (1, TN) row, no sublane->lane relayout.
        o_ref[...] = jax.lax.dot_general(
            w2_ref[...], h,
            dimension_numbers=(((1,), (1,)), ((), ())),
            preferred_element_type=jnp.float32)


def discriminator_forward(x, w1, b1, gamma, beta, w2, *, block_n=1024, stash_z=None):
    # b1 is intentionally unused: a constant per-feature bias added before
    # training-mode BatchNorm is cancelled exactly by the mean subtraction.
    del b1
    n, f = x.shape
    hdim = w1.shape[0]
    itemsize = jnp.dtype(x.dtype).itemsize

    # --- batch tiling: lane-aligned tile, zero-pad N up to a multiple of it -------
    block_n = max(128, _round_up(int(block_n), 128))
    block_n = min(block_n, _round_up(n, 128))
    n_pad = _round_up(n, block_n)
    nt = n_pad // block_n
    if n_pad != n:
        x = jnp.pad(x, ((0, n_pad - n), (0, 0)))

    # --- VMEM budget: keep z resident across passes whenever it fits --------------
    lane = 128
    z_bytes = nt * block_n * _round_up(hdim, lane) * 4
    x_dbuf = 2 * block_n * _round_up(f, lane) * itemsize
    out_dbuf = 2 * 8 * block_n * 4
    param_bytes = 2 * (_round_up(f, 8) + 4 * 8) * _round_up(hdim, lane) * 4
    misc = 2 << 20
    cap = _vmem_capacity_bytes()
    budget = cap * 3 // 4
    if stash_z is None:
        stash_z = (z_bytes + x_dbuf + out_dbuf + param_bytes + misc) <= budget
    needed = (z_bytes if stash_z else 0) + x_dbuf + out_dbuf + param_bytes + misc
    vmem_limit = int(min(budget, max(needed + (2 << 20), 32 << 20)))

    # Weight layout fixed wrapper-side: (in, out) so the kernel does x @ W, no .T.
    w1_t = w1.T.astype(x.dtype)                            # (F, H)
    gamma_r = gamma.reshape(1, hdim).astype(jnp.float32)
    beta_r = beta.reshape(1, hdim).astype(jnp.float32)
    w2_r = w2.reshape(1, hdim).astype(jnp.float32)

    kernel = functools.partial(_disc_kernel, n_rows=n, stash_z=stash_z)

    if stash_z:
        # pass 1 parks x on block 0: no x DMA traffic during the apply pass.
        x_index_map = lambda p, i: (i * (1 - p), 0)
    else:
        x_index_map = lambda p, i: (i, 0)

    n_x_reads = 1 if stash_z else 2
    cost = pl.CostEstimate(
        flops=2 * n_x_reads * n_pad * f * hdim + 8 * n_pad * hdim,
        transcendentals=hdim,
        bytes_accessed=(n_x_reads * n_pad * f * itemsize    # x
                        + 4 * n_pad                          # output
                        + 4 * (f * hdim + 3 * hdim)),        # weights / BN params
    )

    scratch = [
        pltpu.VMEM((1, hdim), jnp.float32),   # sum(z)
        pltpu.VMEM((1, hdim), jnp.float32),   # sum(z^2)
        pltpu.VMEM((1, hdim), jnp.float32),   # folded BN scale
        pltpu.VMEM((1, hdim), jnp.float32),   # folded BN shift
    ]
    if stash_z:
        scratch.append(pltpu.VMEM((nt, block_n, hdim), jnp.float32))   # resident z

    out = pl.pallas_call(
        kernel,
        out_shape=jax.ShapeDtypeStruct((1, n_pad), jnp.float32),
        grid_spec=pltpu.PrefetchScalarGridSpec(
            num_scalar_prefetch=0,
            grid=(2, nt),                                        # (pass, batch tile)
            in_specs=[
                pl.BlockSpec((block_n, f), x_index_map),             # x tile
                pl.BlockSpec((f, hdim), lambda p, i: (0, 0)),        # w1 (in, out)
                pl.BlockSpec((1, hdim), lambda p, i: (0, 0)),        # gamma
                pl.BlockSpec((1, hdim), lambda p, i: (0, 0)),        # beta
                pl.BlockSpec((1, hdim), lambda p, i: (0, 0)),        # w2
            ],
            # Lane-dense (1, block_n) output blocks; pass 0 parks on block 0 (never
            # written), pass 1 writes each block exactly once.
            # NOTE: relies on the serial pass-outer / tile-inner grid order.
            out_specs=pl.BlockSpec((1, block_n), lambda p, i: (0, i * p)),
            scratch_shapes=scratch,
        ),
        compiler_params=pltpu.CompilerParams(
            dimension_semantics=("arbitrary", "arbitrary"),
            vmem_limit_bytes=vmem_limit),
        cost_estimate=cost,
    )(x, w1_t, gamma_r, beta_r, w2_r)

    return out.reshape(n_pad, 1)[:n]     # match PyTorch (N, 1) output


# ------------------------- parameter init + pure-JAX reference -------------------------

def xavier_normal(key, shape):
    # torch.nn.init.xavier_normal_ for a (fan_out, fan_in) Linear weight
    fan_out, fan_in = shape
    std = (2.0 / (fan_in + fan_out)) ** 0.5
    return std * jax.random.normal(key, shape, dtype=jnp.float32)


def make_params(key, in_planes, hidden):
    k1, k2, k3 = jax.random.split(key, 3)
    w1 = xavier_normal(k1, (hidden, in_planes))              # PyTorch (out, in) layout
    bound = 1.0 / (in_planes ** 0.5)
    b1 = jax.random.uniform(k2, (hidden,), minval=-bound, maxval=bound,
                            dtype=jnp.float32)
    gamma = jnp.ones((hidden,), dtype=jnp.float32)
    beta = jnp.zeros((hidden,), dtype=jnp.float32)
    w2 = xavier_normal(k3, (1, hidden))
    return w1, b1, gamma, beta, w2


def reference_forward(x, w1, b1, gamma, beta, w2):
    # Pure-JAX reference of the same forward pass (PyTorch training-mode BN, with bias).
    z = x @ w1.T + b1
    mean = jnp.mean(z, axis=0, keepdims=True)
    var = jnp.mean((z - mean) ** 2, axis=0, keepdims=True)
    z_hat = (z - mean) / jnp.sqrt(var + BN_EPS) * gamma + beta
    h = jnp.where(z_hat >= 0, z_hat, LRELU_SLOPE * z_hat)
    return h @ w2.T


if __name__ == "__main__":
    in_planes, hidden = 32, 32

    key = jax.random.PRNGKey(0)
    kx, kp, kx2 = jax.random.split(key, 3)
    params = make_params(kp, in_planes, hidden)

    # 1) Default path: lane-aligned single tile, z resident in VMEM.
    x = jax.random.normal(kx, (512, in_planes), dtype=jnp.float32)
    out = jax.block_until_ready(discriminator_forward(x, *params))
    ref = reference_forward(x, *params)
    assert out.shape == (512, 1)
    assert jnp.allclose(out, ref, atol=1e-4, rtol=1e-4)

    # 2) Multi-tile + batch padding (600 -> 768, 3 tiles of 256) with z stash.
    x2 = jax.random.normal(kx2, (600, in_planes), dtype=jnp.float32)
    out2 = jax.block_until_ready(discriminator_forward(x2, *params, block_n=256))
    ref2 = reference_forward(x2, *params)
    assert out2.shape == (600, 1)
    assert jnp.allclose(out2, ref2, atol=1e-4, rtol=1e-4)

    # 3) Recompute fallback path (used only when z would not fit the VMEM budget).
    out3 = jax.block_until_ready(
        discriminator_forward(x2, *params, block_n=256, stash_z=False))
    assert jnp.allclose(out3, ref2, atol=1e-4, rtol=1e-4)

    print("KERNEL_OK")
</pallas_src>

<mosaic_0001>
module attributes {stable_mosaic.version = 11 : i64} {
  func.func @_disc_kernel(%arg0: i32, %arg1: i32, %arg2: memref<512x32xf32, #tpu.memory_space<vmem>>, %arg3: memref<32x32xf32, #tpu.memory_space<vmem>>, %arg4: memref<1x32xf32, #tpu.memory_space<vmem>>, %arg5: memref<1x32xf32, #tpu.memory_space<vmem>>, %arg6: memref<1x32xf32, #tpu.memory_space<vmem>>, %arg7: memref<1x512xf32, #tpu.memory_space<vmem>>, %arg8: memref<1x32xf32, #tpu.memory_space<vmem>>, %arg9: memref<1x32xf32, #tpu.memory_space<vmem>>, %arg10: memref<1x32xf32, #tpu.memory_space<vmem>>, %arg11: memref<1x32xf32, #tpu.memory_space<vmem>>, %arg12: memref<1x512x32xf32, #tpu.memory_space<vmem>>) attributes {dimension_semantics = [#tpu.dimension_semantics<arbitrary>, #tpu.dimension_semantics<arbitrary>], iteration_bounds = array<i64: 2, 1>, scalar_prefetch = 0 : i64, scratch_operands = 5 : i64, tpu.core_type = #tpu.core_type<tc>, window_params = [{transform_indices = @transform_0, window_bounds = array<i64: 512, 32>}, {pipeline_mode = #tpu.pipeline_mode<synchronous>, transform_indices = @transform_1, window_bounds = array<i64: 32, 32>}, {pipeline_mode = #tpu.pipeline_mode<synchronous>, transform_indices = @transform_2, window_bounds = array<i64: 1, 32>}, {pipeline_mode = #tpu.pipeline_mode<synchronous>, transform_indices = @transform_3, window_bounds = array<i64: 1, 32>}, {pipeline_mode = #tpu.pipeline_mode<synchronous>, transform_indices = @transform_4, window_bounds = array<i64: 1, 32>}, {transform_indices = @transform_5, window_bounds = array<i64: 1, 512>}]} {
    %c0_i32 = arith.constant 0 : i32
    %0 = arith.cmpi eq, %arg0, %c0_i32 : i32
    %1 = arith.extui %0 : i1 to i32
    %c0_i32_0 = arith.constant 0 : i32
    %2 = arith.cmpi ne, %1, %c0_i32_0 : i32
    scf.if %2 {
      %c0 = arith.constant 0 : index
      %c0_2 = arith.constant 0 : index
      %6 = vector.load %arg2[%c0, %c0_2] : memref<512x32xf32, #tpu.memory_space<vmem>>, vector<512x32xf32>
      %c0_3 = arith.constant 0 : index
      %c0_4 = arith.constant 0 : index
      %7 = vector.load %arg3[%c0_3, %c0_4] : memref<32x32xf32, #tpu.memory_space<vmem>>, vector<32x32xf32>
      %cst = arith.constant dense<0.000000e+00> : vector<512x32xf32>
      %8 = tpu.matmul %6, %7, %cst {dimension_numbers = #tpu.dot_dimension_numbers<[1], [0], [0], [1], [0, 0, 1, 1], [], []>} : vector<512x32xf32>, vector<32x32xf32>, vector<512x32xf32> -> vector<512x32xf32>
      %9 = arith.index_cast %arg1 : i32 to index
      %c0_5 = arith.constant 0 : index
      %c0_6 = arith.constant 0 : index
      %10 = vector.load %arg12[%9, %c0_5, %c0_6] : memref<1x512x32xf32, #tpu.memory_space<vmem>>, vector<1x512x32xf32>
      %11 = vector.shape_cast %10 : vector<1x512x32xf32> to vector<512x32xf32>
      %12 = vector.shape_cast %8 : vector<512x32xf32> to vector<1x512x32xf32>
      tpu.vector_store %arg12[%9, %c0_5, %c0_6], %12 {strides = array<i32>} : memref<1x512x32xf32, #tpu.memory_space<vmem>>, vector<1x512x32xf32>,
      %c0_i32_7 = arith.constant 0 : i32
      %13 = arith.cmpi eq, %arg1, %c0_i32_7 : i32
      %14 = arith.extui %13 : i1 to i32
      %c0_i32_8 = arith.constant 0 : i32
      %15 = arith.cmpi ne, %14, %c0_i32_8 : i32
      scf.if %15 {
        %cst_21 = arith.constant 0.000000e+00 : f32
        %30 = vector.broadcast %cst_21 : f32 to vector<1x32xf32>
        %c0_22 = arith.constant 0 : index
        %c0_23 = arith.constant 0 : index
        %31 = vector.load %arg8[%c0_22, %c0_23] : memref<1x32xf32, #tpu.memory_space<vmem>>, vector<1x32xf32>
        tpu.vector_store %arg8[%c0_22, %c0_23], %30 {strides = array<i32>} : memref<1x32xf32, #tpu.memory_space<vmem>>, vector<1x32xf32>,
        %cst_24 = arith.constant 0.000000e+00 : f32
        %32 = vector.broadcast %cst_24 : f32 to vector<1x32xf32>
        %c0_25 = arith.constant 0 : index
        %c0_26 = arith.constant 0 : index
        %33 = vector.load %arg9[%c0_25, %c0_26] : memref<1x32xf32, #tpu.memory_space<vmem>>, vector<1x32xf32>
        tpu.vector_store %arg9[%c0_25, %c0_26], %32 {strides = array<i32>} : memref<1x32xf32, #tpu.memory_space<vmem>>, vector<1x32xf32>,
      } else {
      }
      %c0_9 = arith.constant 0 : index
      %c0_10 = arith.constant 0 : index
      %16 = vector.load %arg8[%c0_9, %c0_10] : memref<1x32xf32, #tpu.memory_space<vmem>>, vector<1x32xf32>
      %cst_11 = arith.constant dense<0.000000e+00> : vector<32xf32>
      %17 = vector.multi_reduction <add>, %8, %cst_11 [0] : vector<512x32xf32> to vector<32xf32>
      %18 = vector.shape_cast %17 : vector<32xf32> to vector<1x32xf32>
      %19 = arith.addf %16, %18 : vector<1x32xf32>
      %c0_12 = arith.constant 0 : index
      %c0_13 = arith.constant 0 : index
      %20 = vector.load %arg8[%c0_12, %c0_13] : memref<1x32xf32, #tpu.memory_space<vmem>>, vector<1x32xf32>
      tpu.vector_store %arg8[%c0_12, %c0_13], %19 {strides = array<i32>} : memref<1x32xf32, #tpu.memory_space<vmem>>, vector<1x32xf32>,
      %c0_14 = arith.constant 0 : index
      %c0_15 = arith.constant 0 : index
      %21 = vector.load %arg9[%c0_14, %c0_15] : memref<1x32xf32, #tpu.memory_space<vmem>>, vector<1x32xf32>
      %22 = arith.mulf %8, %8 : vector<512x32xf32>
      %cst_16 = arith.constant dense<0.000000e+00> : vector<32xf32>
      %23 = vector.multi_reduction <add>, %22, %cst_16 [0] : vector<512x32xf32> to vector<32xf32>
      %24 = vector.shape_cast %23 : vector<32xf32> to vector<1x32xf32>
      %25 = arith.addf %21, %24 : vector<1x32xf32>
      %c0_17 = arith.constant 0 : index
      %c0_18 = arith.constant 0 : index
      %26 = vector.load %arg9[%c0_17, %c0_18] : memref<1x32xf32, #tpu.memory_space<vmem>>, vector<1x32xf32>
      tpu.vector_store %arg9[%c0_17, %c0_18], %25 {strides = array<i32>} : memref<1x32xf32, #tpu.memory_space<vmem>>, vector<1x32xf32>,
      %c0_i32_19 = arith.constant 0 : i32
      %27 = arith.cmpi eq, %arg1, %c0_i32_19 : i32
      %28 = arith.extui %27 : i1 to i32
      %c0_i32_20 = arith.constant 0 : i32
      %29 = arith.cmpi ne, %28, %c0_i32_20 : i32
      scf.if %29 {
        %c0_21 = arith.constant 0 : index
        %c0_22 = arith.constant 0 : index
        %30 = vector.load %arg8[%c0_21, %c0_22] : memref<1x32xf32, #tpu.memory_space<vmem>>, vector<1x32xf32>
        %cst_23 = arith.constant 0.001953125 : f32
        %31 = vector.broadcast %cst_23 : f32 to vector<1x32xf32>
        %32 = arith.mulf %30, %31 : vector<1x32xf32>
        %c0_24 = arith.constant 0 : index
        %c0_25 = arith.constant 0 : index
        %33 = vector.load %arg9[%c0_24, %c0_25] : memref<1x32xf32, #tpu.memory_space<vmem>>, vector<1x32xf32>
        %cst_26 = arith.constant 0.001953125 : f32
        %34 = vector.broadcast %cst_26 : f32 to vector<1x32xf32>
        %35 = arith.mulf %33, %34 : vector<1x32xf32>
        %36 = arith.mulf %32, %32 : vector<1x32xf32>
        %37 = arith.subf %35, %36 : vector<1x32xf32>
        %c0_27 = arith.constant 0 : index
        %c0_28 = arith.constant 0 : index
        %38 = vector.load %arg4[%c0_27, %c0_28] : memref<1x32xf32, #tpu.memory_space<vmem>>, vector<1x32xf32>
        %cst_29 = arith.constant 9.99999974E-6 : f32
        %39 = vector.broadcast %cst_29 : f32 to vector<1x32xf32>
        %40 = arith.addf %37, %39 : vector<1x32xf32>
        %41 = math.rsqrt %40 : vector<1x32xf32>
        %42 = arith.mulf %38, %41 : vector<1x32xf32>
        %c0_30 = arith.constant 0 : index
        %c0_31 = arith.constant 0 : index
        %43 = vector.load %arg10[%c0_30, %c0_31] : memref<1x32xf32, #tpu.memory_space<vmem>>, vector<1x32xf32>
        tpu.vector_store %arg10[%c0_30, %c0_31], %42 {strides = array<i32>} : memref<1x32xf32, #tpu.memory_space<vmem>>, vector<1x32xf32>,
        %c0_32 = arith.constant 0 : index
        %c0_33 = arith.constant 0 : index
        %44 = vector.load %arg5[%c0_32, %c0_33] : memref<1x32xf32, #tpu.memory_space<vmem>>, vector<1x32xf32>
        %45 = arith.mulf %32, %42 : vector<1x32xf32>
        %46 = arith.subf %44, %45 : vector<1x32xf32>
        %c0_34 = arith.constant 0 : index
        %c0_35 = arith.constant 0 : index
        %47 = vector.load %arg11[%c0_34, %c0_35] : memref<1x32xf32, #tpu.memory_space<vmem>>, vector<1x32xf32>
        tpu.vector_store %arg11[%c0_34, %c0_35], %46 {strides = array<i32>} : memref<1x32xf32, #tpu.memory_space<vmem>>, vector<1x32xf32>,
      } else {
      }
    } else {
    }
    %c1_i32 = arith.constant 1 : i32
    %3 = arith.cmpi eq, %arg0, %c1_i32 : i32
    %4 = arith.extui %3 : i1 to i32
    %c0_i32_1 = arith.constant 0 : i32
    %5 = arith.cmpi ne, %4, %c0_i32_1 : i32
    scf.if %5 {
      %6 = arith.index_cast %arg1 : i32 to index
      %c0 = arith.constant 0 : index
      %c0_2 = arith.constant 0 : index
      %7 = vector.load %arg12[%6, %c0, %c0_2] : memref<1x512x32xf32, #tpu.memory_space<vmem>>, vector<1x512x32xf32>
      %8 = vector.shape_cast %7 : vector<1x512x32xf32> to vector<512x32xf32>
      %c0_3 = arith.constant 0 : index
      %c0_4 = arith.constant 0 : index
      %9 = vector.load %arg10[%c0_3, %c0_4] : memref<1x32xf32, #tpu.memory_space<vmem>>, vector<1x32xf32>
      %10 = vector.broadcast %9 : vector<1x32xf32> to vector<512x32xf32>
      %11 = arith.mulf %8, %10 : vector<512x32xf32>
      %c0_5 = arith.constant 0 : index
      %c0_6 = arith.constant 0 : index
      %12 = vector.load %arg11[%c0_5, %c0_6] : memref<1x32xf32, #tpu.memory_space<vmem>>, vector<1x32xf32>
      %13 = vector.broadcast %12 : vector<1x32xf32> to vector<512x32xf32>
      %14 = arith.addf %11, %13 : vector<512x32xf32>
      %cst = arith.constant 0.000000e+00 : f32
      %15 = vector.broadcast %cst : f32 to vector<512x32xf32>
      %16 = arith.cmpf oge, %14, %15 : vector<512x32xf32>
      %cst_7 = arith.constant 2.000000e-01 : f32
      %17 = vector.broadcast %cst_7 : f32 to vector<512x32xf32>
      %18 = arith.mulf %17, %14 : vector<512x32xf32>
      %19 = arith.select %16, %14, %18 : vector<512x32xi1>, vector<512x32xf32>
      %c0_8 = arith.constant 0 : index
      %c0_9 = arith.constant 0 : index
      %20 = vector.load %arg6[%c0_8, %c0_9] : memref<1x32xf32, #tpu.memory_space<vmem>>, vector<1x32xf32>
      %cst_10 = arith.constant dense<0.000000e+00> : vector<1x512xf32>
      %21 = tpu.matmul %20, %19, %cst_10 {dimension_numbers = #tpu.dot_dimension_numbers<[1], [1], [0], [0], [0, 0, 1, 0], [], []>} : vector<1x32xf32>, vector<512x32xf32>, vector<1x512xf32> -> vector<1x512xf32>
      %c0_11 = arith.constant 0 : index
      %c0_12 = arith.constant 0 : index
      %22 = vector.load %arg7[%c0_11, %c0_12] : memref<1x512xf32, #tpu.memory_space<vmem>>, vector<1x512xf32>
      tpu.vector_store %arg7[%c0_11, %c0_12], %21 {strides = array<i32>} : memref<1x512xf32, #tpu.memory_space<vmem>>, vector<1x512xf32>,
    } else {
    }
    return
  }
  func.func @transform_0(%arg0: i32, %arg1: i32) -> (i32, i32) {
    %c1_i32 = arith.constant 1 : i32
    %0 = arith.subi %c1_i32, %arg0 : i32
    %1 = arith.muli %arg1, %0 : i32
    %c0_i32 = arith.constant 0 : i32
    %c0_i32_0 = arith.constant 0 : i32
    return %1, %c0_i32 : i32, i32
  }
  func.func @transform_1(%arg0: i32, %arg1: i32) -> (i32, i32) {
    %c0_i32 = arith.constant 0 : i32
    %c0_i32_0 = arith.constant 0 : i32
    %c0_i32_1 = arith.constant 0 : i32
    return %c0_i32, %c0_i32_0 : i32, i32
  }
  func.func @transform_2(%arg0: i32, %arg1: i32) -> (i32, i32) {
    %c0_i32 = arith.constant 0 : i32
    %c0_i32_0 = arith.constant 0 : i32
    %c0_i32_1 = arith.constant 0 : i32
    return %c0_i32, %c0_i32_0 : i32, i32
  }
  func.func @transform_3(%arg0: i32, %arg1: i32) -> (i32, i32) {
    %c0_i32 = arith.constant 0 : i32
    %c0_i32_0 = arith.constant 0 : i32
    %c0_i32_1 = arith.constant 0 : i32
    return %c0_i32, %c0_i32_0 : i32, i32
  }
  func.func @transform_4(%arg0: i32, %arg1: i32) -> (i32, i32) {
    %c0_i32 = arith.constant 0 : i32
    %c0_i32_0 = arith.constant 0 : i32
    %c0_i32_1 = arith.constant 0 : i32
    return %c0_i32, %c0_i32_0 : i32, i32
  }
  func.func @transform_5(%arg0: i32, %arg1: i32) -> (i32, i32) {
    %0 = arith.muli %arg1, %arg0 : i32
    %c0_i32 = arith.constant 0 : i32
    %c0_i32_0 = arith.constant 0 : i32
    return %c0_i32, %0 : i32, i32
  }
}

</mosaic_0001>

<bundles_post_ra>
// kernel: tpu_custom_call.1
= control target key start
LH: loop header
LB: loop body
LE: loop exit
PB: predicated region body
PF: predicated region fallthrough
CT: control target
= control target key end

     0   :  { %10 = vsyncpa [#allocation8], 0  ;;  %s3756_s0 = inlined_call_operand.vmem [shape: f32[512,32], index: 0, kind: input, shape index: {}]   ;;  %s3757_s1 = inlined_call_operand.vmem [shape: f32[32,32], index: 1, kind: input, shape index: {}]   ;;  %s3758_s2 = inlined_call_operand.vmem [shape: f32[1,32], index: 2, kind: input, shape index: {}]   ;;  %s3759_s3 = inlined_call_operand.vmem [shape: f32[1,32], index: 3, kind: input, shape index: {}]   ;;  %s3760_s4 = inlined_call_operand.vmem [shape: f32[1,32], index: 4, kind: input, shape index: {}]   ;;  %s3761_s5 = inlined_call_operand.hbm [shape: f32[1,512], index: 5, kind: output, shape index: {}]  }
   0x1   :  { %12 = vsyncpa [#allocation8 + $0x1], 0  ;;  %s2816_s18 = smov 0   ;;  %s2818_s19 = smov 0  }
   0x2   :  { %s2820_s20 = smov 0  }
   0x3 LB: > { %s2197_s21 = sadd.s32 4294967295, %s2781_s20   ;;  %s2198_s22 = sadd.s32 4294967294, %s2781_s20   ;;  %s2781_s20 = sphi %s2820_s20, %s18_s20   ;;  %s2777_s19 = sphi %s2818_s19, %s3766_s19   ;;  %s2773_s18 = sphi %s2816_s18, %s3765_s18  }
   0x4   : > { %s30_s23 = sadd.s32 1, %s2777_s19  ;;  %p2202_p0 = scmp.ge.s32.totalorder %s2781_s20, 1 }
   0x5   : > { %p32_p1 = scmp.ge.s32.totalorder %s30_s23, 2  ;;  %p213_p2 = scmp.lt.s32.totalorder %s2781_s20, 3 }
   0x7   : > { %s3768_s23 = smov (%p32_p1, %s30_s23), 0  ;;  %p214_p3 = pnand %p2202_p0, %p213_p2 }
   0x8   : > { %p2203_p4 = scmp.ne.s32.totalorder (!%p214_p3), %s2773_s18, 0 }
   0x9   : > { %217 = sbr.rel (%p214_p3) target bundleno = 764 (0x2fc), region = 40 }
  0x10   : > { %258 = sbr.rel (%p2203_p4) target bundleno = 417 (0x1a1), region = 44  ;;  %v323_v0 = vld [vmem:[%s3757_s1] sm:$0xff] (!%p2203_p4)  ;;  %v324_v1 = vld [vmem:[%s3757_s1 + $0x8] sm:$0xff] (!%p2203_p4)  ;;  %v325_v2 = vld [vmem:[%s3757_s1 + $0x10] sm:$0xff] (!%p2203_p4)  ;;  %vm327_vm0 = vcmask (!%p2203_p4), 261120   ;;  %vm975_vm1 = vcmask (!%p2203_p4), 253952  }
  0x11   : > { %v2581_v3 = vpack.c.bf16 (!%p2203_p4), %v324_v1, %v323_v0  ;;  %v326_v4 = vld [vmem:[%s3757_s1 + $0x18] sm:$0xff] (!%p2203_p4)  ;;  %v259_v5 = vld [vmem:[%s3756_s0] sm:$0xff] (!%p2203_p4)  ;;  %v260_v7 = vld [vmem:[%s3756_s0 + $0x8] sm:$0xff] (!%p2203_p4) }
  0x12   : > { %v2585_v6 = vpack.c.bf16 (!%p2203_p4), %v326_v4, %v325_v2  ;;  %2485 = vmatprep.mubr.msk.f32.mxu0 (!%p2203_p4), %vm327_vm0, %v259_v5  ;;  %v261_v8 = vld [vmem:[%s3756_s0 + $0x10] sm:$0xff] (!%p2203_p4)  ;;  %v262_v9 = vld [vmem:[%s3756_s0 + $0x18] sm:$0xff] (!%p2203_p4)  ;;  %v291_v10 = vld [vmem:[%s3756_s0 + $0x100] sm:$0xff] (!%p2203_p4) }
  0x13   : > { %2582 = vmatprep.subr.bf16.mxu0 (!%p2203_p4), %v2581_v3  ;;  %2685 = vmatprep.subr.bf16.mxu1 (!%p2203_p4), %v2581_v3  ;;  %v292_v11 = vld [vmem:[%s3756_s0 + $0x108] sm:$0xff] (!%p2203_p4)  ;;  %v293_v12 = vld [vmem:[%s3756_s0 + $0x110] sm:$0xff] (!%p2203_p4)  ;;  %v263_v13 = vld [vmem:[%s3756_s0 + $0x20] sm:$0xff] (!%p2203_p4) }
  0x14   : > { %2584 = vmatpush3.bf16.msra.mxu0 (!%p2203_p4), %v2581_v3  ;;  %2687 = vmatpush3.bf16.msra.mxu1 (!%p2203_p4), %v2581_v3  ;;  %v294_v14 = vld [vmem:[%s3756_s0 + $0x118] sm:$0xff] (!%p2203_p4)  ;;  %v264_v15 = vld [vmem:[%s3756_s0 + $0x28] sm:$0xff] (!%p2203_p4)  ;;  %v295_v16 = vld [vmem:[%s3756_s0 + $0x120] sm:$0xff] (!%p2203_p4) }
  0x15   : > { %2586 = vmatprep.subr.bf16.mxu0 (!%p2203_p4), %v2585_v6  ;;  %2686 = vmatprep.subr.bf16.mxu1 (!%p2203_p4), %v2585_v6  ;;  %v265_v17 = vld [vmem:[%s3756_s0 + $0x30] sm:$0xff] (!%p2203_p4)  ;;  %v296_v18 = vld [vmem:[%s3756_s0 + $0x128] sm:$0xff] (!%p2203_p4)  ;;  %v266_v19 = vld [vmem:[%s3756_s0 + $0x38] sm:$0xff] (!%p2203_p4) }
  0x16   : > { %2533 = vmatprep.mubr.msk.f32.mxu1 (!%p2203_p4), %vm327_vm0, %v291_v10  ;;  %v297_v20 = vld [vmem:[%s3756_s0 + $0x130] sm:$0xff] (!%p2203_p4)  ;;  %v267_v21 = vld [vmem:[%s3756_s0 + $0x40] sm:$0xff] (!%p2203_p4)  ;;  %v298_v22 = vld [vmem:[%s3756_s0 + $0x138] sm:$0xff] (!%p2203_p4) }
  0x17   : > { %v268_v23 = vld [vmem:[%s3756_s0 + $0x48] sm:$0xff]  ;;  %v299_v24 = vld [vmem:[%s3756_s0 + $0x140] sm:$0xff]  ;;  %v269_v25 = vld [vmem:[%s3756_s0 + $0x50] sm:$0xff] }
  0x18   : > { %2588 = vmatpush3.bf16.msra.mxu0 %v2585_v6  ;;  %2688 = vmatpush3.bf16.msra.mxu1 %v2585_v6  ;;  %v300_v26 = vld [vmem:[%s3756_s0 + $0x148] sm:$0xff]  ;;  %v270_v27 = vld [vmem:[%s3756_s0 + $0x58] sm:$0xff]  ;;  %v301_v28 = vld [vmem:[%s3756_s0 + $0x150] sm:$0xff]  ;;  %v2783_v6 = vmov 0.0  }
  0x19   : > { %v271_v29 = vld [vmem:[%s3756_s0 + $0x60] sm:$0xff]  ;;  %v302_v30 = vld [vmem:[%s3756_s0 + $0x158] sm:$0xff]  ;;  %v272_v31 = vld [vmem:[%s3756_s0 + $0x68] sm:$0xff]  ;;  %976 = vst.msk [vmem:[#allocation2] sm:$0x1] %vm975_vm1, %v2783_v6 }
  0x1a   : > { %v303_v32 = vld [vmem:[%s3756_s0 + $0x160] sm:$0xff]  ;;  %v273_v33 = vld [vmem:[%s3756_s0 + $0x70] sm:$0xff]  ;;  %v304_v34 = vld [vmem:[%s3756_s0 + $0x168] sm:$0xff]  ;;  %977 = vst.msk [vmem:[#allocation3] sm:$0x1] %vm975_vm1, %v2783_v6 }
  0x1b   : > { %2486 = vmatmul.mubr.msk.f32.vlgmr.msra.gmra.mrb[0].mxu0 %vm327_vm0, %v260_v7  ;;  %2534 = vmatmul.mubr.msk.f32.vlgmr.msra.gmra.mrb[0].mxu1 %vm327_vm0, %v292_v11  ;;  %v274_v35 = vld [vmem:[%s3756_s0 + $0x78] sm:$0xff]  ;;  %v305_v36 = vld [vmem:[%s3756_s0 + $0x170] sm:$0xff]  ;;  %v275_v37 = vld [vmem:[%s3756_s0 + $0x80] sm:$0xff] }
  0x1c   : > { %2488 = vmatprep.mubr.msk.f32.mxu0 %vm327_vm0, %v261_v8  ;;  %2536 = vmatprep.mubr.msk.f32.mxu1 %vm327_vm0, %v293_v12  ;;  %v306_v38 = vld [vmem:[%s3756_s0 + $0x178] sm:$0xff]  ;;  %v276_v39 = vld [vmem:[%s3756_s0 + $0x88] sm:$0xff]  ;;  %v307_v40 = vld [vmem:[%s3756_s0 + $0x180] sm:$0xff] }
  0x1d   : > { %v277_v41 = vld [vmem:[%s3756_s0 + $0x90] sm:$0xff]  ;;  %v308_v42 = vld [vmem:[%s3756_s0 + $0x188] sm:$0xff]  ;;  %v278_v43 = vld [vmem:[%s3756_s0 + $0x98] sm:$0xff] }
  0x1e   : > { %v309_v44 = vld [vmem:[%s3756_s0 + $0x190] sm:$0xff]  ;;  %v279_v45 = vld [vmem:[%s3756_s0 + $0xa0] sm:$0xff]  ;;  %v310_v46 = vld [vmem:[%s3756_s0 + $0x198] sm:$0xff] }
  0x1f   : > { %2489 = vmatmul.mubr.msk.f32.gmra.mrb[2].mxu0 %vm327_vm0, %v262_v9  ;;  %2537 = vmatmul.mubr.msk.f32.gmra.mrb[2].mxu1 %vm327_vm0, %v294_v14  ;;  %v280_v47 = vld [vmem:[%s3756_s0 + $0xa8] sm:$0xff]  ;;  %v311_v48 = vld [vmem:[%s3756_s0 + $0x1a0] sm:$0xff]  ;;  %v281_v49 = vld [vmem:[%s3756_s0 + $0xb0] sm:$0xff] }
  0x20   : > { %2491 = vmatprep.mubr.msk.f32.mxu0 %vm327_vm0, %v263_v13  ;;  %2539 = vmatprep.mubr.msk.f32.mxu1 %vm327_vm0, %v295_v16  ;;  %v312_v50 = vld [vmem:[%s3756_s0 + $0x1a8] sm:$0xff]  ;;  %v282_v51 = vld [vmem:[%s3756_s0 + $0xb8] sm:$0xff]  ;;  %v313_v52 = vld [vmem:[%s3756_s0 + $0x1b0] sm:$0xff] }
  0x21   : > { %v283_v53 = vld [vmem:[%s3756_s0 + $0xc0] sm:$0xff]  ;;  %v314_v54 = vld [vmem:[%s3756_s0 + $0x1b8] sm:$0xff]  ;;  %v284_v55 = vld [vmem:[%s3756_s0 + $0xc8] sm:$0xff] }
  0x22   : > { %v315_v56 = vld [vmem:[%s3756_s0 + $0x1c0] sm:$0xff]  ;;  %v285_v57 = vld [vmem:[%s3756_s0 + $0xd0] sm:$0xff]  ;;  %v316_v58 = vld [vmem:[%s3756_s0 + $0x1c8] sm:$0xff] }
  0x23   : > { %2492 = vmatmul.mubr.msk.f32.gmra.mrb[4].mxu0 %vm327_vm0, %v264_v15  ;;  %2540 = vmatmul.mubr.msk.f32.gmra.mrb[4].mxu1 %vm327_vm0, %v296_v18  ;;  %v286_v59 = vld [vmem:[%s3756_s0 + $0xd8] sm:$0xff]  ;;  %v317_v60 = vld [vmem:[%s3756_s0 + $0x1d0] sm:$0xff]  ;;  %v287_v61 = vld [vmem:[%s3756_s0 + $0xe0] sm:$0xff] }
  0x24   : > { %2494 = vmatprep.mubr.msk.f32.mxu0 %vm327_vm0, %v265_v17  ;;  %2542 = vmatprep.mubr.msk.f32.mxu1 %vm327_vm0, %v297_v20  ;;  %v318_v62 = vld [vmem:[%s3756_s0 + $0x1d8] sm:$0xff]  ;;  %v288_v63 = vld [vmem:[%s3756_s0 + $0xe8] sm:$0xff]  ;;  %v319_v0 = vld [vmem:[%s3756_s0 + $0x1e0] sm:$0xff] }
  0x25   : > { %v289_v1 = vld [vmem:[%s3756_s0 + $0xf0] sm:$0xff]  ;;  %v320_v2 = vld [vmem:[%s3756_s0 + $0x1e8] sm:$0xff]  ;;  %v290_v3 = vld [vmem:[%s3756_s0 + $0xf8] sm:$0xff] }
  0x26   : > { %v321_v4 = vld [vmem:[%s3756_s0 + $0x1f0] sm:$0xff]  ;;  %v322_v5 = vld [vmem:[%s3756_s0 + $0x1f8] sm:$0xff] }
  0x27   : > { %2495 = vmatmul.mubr.msk.f32.gmra.mrb[6].mxu0 %vm327_vm0, %v266_v19  ;;  %2543 = vmatmul.mubr.msk.f32.gmra.mrb[6].mxu1 %vm327_vm0, %v298_v22 }
  0x28   : > { %2497 = vmatprep.mubr.msk.f32.mxu0 %vm327_vm0, %v267_v21  ;;  %2545 = vmatprep.mubr.msk.f32.mxu1 %vm327_vm0, %v299_v24 }
  0x2b   : > { %2498 = vmatmul.mubr.msk.f32.gmra.mrb[8].mxu0 %vm327_vm0, %v268_v23  ;;  %2546 = vmatmul.mubr.msk.f32.gmra.mrb[8].mxu1 %vm327_vm0, %v300_v26 }
  0x2c   : > { %2500 = vmatprep.mubr.msk.f32.mxu0 %vm327_vm0, %v269_v25  ;;  %2548 = vmatprep.mubr.msk.f32.mxu1 %vm327_vm0, %v301_v28 }
  0x2f   : > { %2501 = vmatmul.mubr.msk.f32.gmra.mrb[10].mxu0 %vm327_vm0, %v270_v27  ;;  %2549 = vmatmul.mubr.msk.f32.gmra.mrb[10].mxu1 %vm327_vm0, %v302_v30 }
  0x30   : > { %2503 = vmatprep.mubr.msk.f32.mxu0 %vm327_vm0, %v271_v29  ;;  %2551 = vmatprep.mubr.msk.f32.mxu1 %vm327_vm0, %v303_v32 }
  0x33   : > { %2504 = vmatmul.mubr.msk.f32.gmra.mrb[12].mxu0 %vm327_vm0, %v272_v31  ;;  %2552 = vmatmul.mubr.msk.f32.gmra.mrb[12].mxu1 %vm327_vm0, %v304_v34 }
  0x34   : > { %2506 = vmatprep.mubr.msk.f32.mxu0 %vm327_vm0, %v273_v33  ;;  %2554 = vmatprep.mubr.msk.f32.mxu1 %vm327_vm0, %v305_v36 }
  0x37   : > { %2507 = vmatmul.mubr.msk.f32.gmra.mrb[14].mxu0 %vm327_vm0, %v274_v35  ;;  %2555 = vmatmul.mubr.msk.f32.gmra.mrb[14].mxu1 %vm327_vm0, %v306_v38 }
  0x38   : > { %2509 = vmatprep.mubr.msk.f32.mxu0 %vm327_vm0, %v275_v37  ;;  %2557 = vmatprep.mubr.msk.f32.mxu1 %vm327_vm0, %v307_v40 }
  0x3b   : > { %2510 = vmatmul.mubr.msk.f32.gmra.mrb[16].mxu0 %vm327_vm0, %v276_v39  ;;  %2558 = vmatmul.mubr.msk.f32.gmra.mrb[16].mxu1 %vm327_vm0, %v308_v42 }
  0x3c   : > { %2512 = vmatprep.mubr.msk.f32.mxu0 %vm327_vm0, %v277_v41  ;;  %2560 = vmatprep.mubr.msk.f32.mxu1 %vm327_vm0, %v309_v44 }
  0x3f   : > { %2513 = vmatmul.mubr.msk.f32.gmra.mrb[18].mxu0 %vm327_vm0, %v278_v43  ;;  %2561 = vmatmul.mubr.msk.f32.gmra.mrb[18].mxu1 %vm327_vm0, %v310_v46 }
  0x40   : > { %2515 = vmatprep.mubr.msk.f32.mxu0 %vm327_vm0, %v279_v45  ;;  %2563 = vmatprep.mubr.msk.f32.mxu1 %vm327_vm0, %v311_v48 }
  0x43   : > { %2516 = vmatmul.mubr.msk.f32.gmra.mrb[20].mxu0 %vm327_vm0, %v280_v47  ;;  %2564 = vmatmul.mubr.msk.f32.gmra.mrb[20].mxu1 %vm327_vm0, %v312_v50 }
  0x44   : > { %2518 = vmatprep.mubr.msk.f32.mxu0 %vm327_vm0, %v281_v49  ;;  %2566 = vmatprep.mubr.msk.f32.mxu1 %vm327_vm0, %v313_v52 }
  0x47   : > { %2519 = vmatmul.mubr.msk.f32.gmra.mrb[22].mxu0 %vm327_vm0, %v282_v51  ;;  %2567 = vmatmul.mubr.msk.f32.gmra.mrb[22].mxu1 %vm327_vm0, %v314_v54 }
  0x48   : > { %2521 = vmatprep.mubr.msk.f32.mxu0 %vm327_vm0, %v283_v53  ;;  %2569 = vmatprep.mubr.msk.f32.mxu1 %vm327_vm0, %v315_v56 }
  0x4b   : > { %2522 = vmatmul.mubr.msk.f32.gmra.mrb[24].mxu0 %vm327_vm0, %v284_v55  ;;  %2570 = vmatmul.mubr.msk.f32.gmra.mrb[24].mxu1 %vm327_vm0, %v316_v58 }
  0x4c   : > { %2524 = vmatprep.mubr.msk.f32.mxu0 %vm327_vm0, %v285_v57  ;;  %2572 = vmatprep.mubr.msk.f32.mxu1 %vm327_vm0, %v317_v60 }
  0x4f   : > { %2525 = vmatmul.mubr.msk.f32.gmra.mrb[26].mxu0 %vm327_vm0, %v286_v59  ;;  %2573 = vmatmul.mubr.msk.f32.gmra.mrb[26].mxu1 %vm327_vm0, %v318_v62 }
  0x50   : > { %2527 = vmatprep.mubr.msk.f32.mxu0 %vm327_vm0, %v287_v61  ;;  %2575 = vmatprep.mubr.msk.f32.mxu1 %vm327_vm0, %v319_v0 }
  0x53   : > { %2528 = vmatmul.mubr.msk.f32.gmra.mrb[28].mxu0 %vm327_vm0, %v288_v63  ;;  %2576 = vmatmul.mubr.msk.f32.gmra.mrb[28].mxu1 %vm327_vm0, %v320_v2 }
  0x54   : > { %2530 = vmatprep.mubr.msk.f32.mxu0 %vm327_vm0, %v289_v1  ;;  %2578 = vmatprep.mubr.msk.f32.mxu1 %vm327_vm0, %v321_v4 }
  0x57   : > { %2531 = vmatmul.mubr.msk.f32.gmra.mrb[30].mxu0 %vm327_vm0, %v290_v3  ;;  %2579 = vmatmul.mubr.msk.f32.gmra.mrb[30].mxu1 %vm327_vm0, %v322_v5 }
  0xee   : > { %v2487_v7 = vpop.f32.mrb[0].mxu0  ;;  %v3114_v15 = vpop.f32.mrb[0].mxu1 }
  0xef   : > { %908 = vst.msk [vmem:[#allocation6 + $0x8] sm:$0xff] %vm327_vm0, %v2487_v7  ;;  %v980_v8 = vsel %vm327_vm0, %v2487_v7, 0.0  ;;  %v1117_v9 = vmul.f32 %v2487_v7, %v2487_v7  ;;  %v586_v10 = vpop.f32.mrb[1].mxu0  ;;  %940 = vst.msk [vmem:[#allocation6 + $0x108] sm:$0xff] %vm327_vm0, %v3114_v15  ;;  %v3119_v18 = vpop.f32.mrb[1].mxu1 }
  0xf0   : > { %907 = vst.msk [vmem:[#allocation6] sm:$0xff] %vm327_vm0, %v586_v10  ;;  %v979_v11 = vsel %vm327_vm0, %v586_v10, 0.0  ;;  %v1116_v12 = vmul.f32 %v586_v10, %v586_v10  ;;  %939 = vst.msk [vmem:[#allocation6 + $0x100] sm:$0xff] %vm327_vm0, %v3119_v18 }
  0xf1   : > { %v1181_v13 = vsel %vm327_vm0, %v1117_v9, 0.0  ;;  %v981_v14 = vadd.f32 %v980_v8, %v979_v11 }
  0xf2   : > { %v1180_v16 = vsel %vm327_vm0, %v1116_v12, 0.0  ;;  %v2490_v17 = vpop.f32.mrb[2].mxu0  ;;  %v3126_v25 = vpop.f32.mrb[2].mxu1 }
  0xf3   : > { %v1182_v19 = vadd.f32 %v1181_v13, %v1180_v16  ;;  %910 = vst.msk [vmem:[#allocation6 + $0x18] sm:$0xff] %vm327_vm0, %v2490_v17  ;;  %v596_v20 = vpop.f32.mrb[3].mxu0  ;;  %v1119_v21 = vmul.f32 %v2490_v17, %v2490_v17  ;;  %v984_v26 = vsel %vm327_vm0, %v2490_v17, 0.0  ;;  %942 = vst.msk [vmem:[#allocation6 + $0x118] sm:$0xff] %vm327_vm0, %v3126_v25  ;;  %v3132_v29 = vpop.f32.mrb[3].mxu1 }
  0xf4   : > { %909 = vst.msk [vmem:[#allocation6 + $0x10] sm:$0xff] %vm327_vm0, %v596_v20  ;;  %v982_v22 = vsel %vm327_vm0, %v596_v20, 0.0  ;;  %v1118_v23 = vmul.f32 %v596_v20, %v596_v20  ;;  %941 = vst.msk [vmem:[#allocation6 + $0x110] sm:$0xff] %vm327_vm0, %v3132_v29 }
  0xf5   : > { %v983_v24 = vadd.f32 %v982_v22, %v981_v14  ;;  %v1185_v33 = vsel %vm327_vm0, %v1119_v21, 0.0 }
  0xf6   : > { %v1183_v27 = vsel %vm327_vm0, %v1118_v23, 0.0  ;;  %v2493_v28 = vpop.f32.mrb[4].mxu0  ;;  %v3140_v39 = vpop.f32.mrb[4].mxu1 }
  0xf7   : > { %v1184_v30 = vadd.f32 %v1183_v27, %v1182_v19  ;;  %912 = vst.msk [vmem:[#allocation6 + $0x28] sm:$0xff] %vm327_vm0, %v2493_v28  ;;  %v606_v31 = vpop.f32.mrb[5].mxu0  ;;  %v985_v32 = vadd.f32 %v984_v26, %v983_v24  ;;  %v1121_v34 = vmul.f32 %v2493_v28, %v2493_v28  ;;  %v988_v40 = vsel %vm327_vm0, %v2493_v28, 0.0  ;;  %944 = vst.msk [vmem:[#allocation6 + $0x128] sm:$0xff] %vm327_vm0, %v3140_v39  ;;  %v3146_v43 = vpop.f32.mrb[5].mxu1 }
  0xf8   : > { %911 = vst.msk [vmem:[#allocation6 + $0x20] sm:$0xff] %vm327_vm0, %v606_v31  ;;  %v986_v35 = vsel %vm327_vm0, %v606_v31, 0.0  ;;  %v1120_v36 = vmul.f32 %v606_v31, %v606_v31  ;;  %943 = vst.msk [vmem:[#allocation6 + $0x120] sm:$0xff] %vm327_vm0, %v3146_v43 }
  0xf9   : > { %v987_v37 = vadd.f32 %v986_v35, %v985_v32  ;;  %v1186_v38 = vadd.f32 %v1185_v33, %v1184_v30  ;;  %v1189_v47 = vsel %vm327_vm0, %v1121_v34, 0.0 }
  0xfa   : > { %v1187_v41 = vsel %vm327_vm0, %v1120_v36, 0.0  ;;  %v2496_v42 = vpop.f32.mrb[6].mxu0  ;;  %v3154_v53 = vpop.f32.mrb[6].mxu1 }
  0xfb   : > { %v1188_v44 = vadd.f32 %v1187_v41, %v1186_v38  ;;  %914 = vst.msk [vmem:[#allocation6 + $0x38] sm:$0xff] %vm327_vm0, %v2496_v42  ;;  %v616_v45 = vpop.f32.mrb[7].mxu0  ;;  %v989_v46 = vadd.f32 %v988_v40, %v987_v37  ;;  %v1123_v48 = vmul.f32 %v2496_v42, %v2496_v42  ;;  %v992_v54 = vsel %vm327_vm0, %v2496_v42, 0.0  ;;  %946 = vst.msk [vmem:[#allocation6 + $0x138] sm:$0xff] %vm327_vm0, %v3154_v53  ;;  %v3160_v57 = vpop.f32.mrb[7].mxu1 }
  0xfc   : > { %913 = vst.msk [vmem:[#allocation6 + $0x30] sm:$0xff] %vm327_vm0, %v616_v45  ;;  %v990_v49 = vsel %vm327_vm0, %v616_v45, 0.0  ;;  %v1122_v50 = vmul.f32 %v616_v45, %v616_v45  ;;  %945 = vst.msk [vmem:[#allocation6 + $0x130] sm:$0xff] %vm327_vm0, %v3160_v57 }
  0xfd   : > { %v991_v51 = vadd.f32 %v990_v49, %v989_v46  ;;  %v1190_v52 = vadd.f32 %v1189_v47, %v1188_v44  ;;  %v1193_v61 = vsel %vm327_vm0, %v1123_v48, 0.0 }
  0xfe   : > { %v1191_v55 = vsel %vm327_vm0, %v1122_v50, 0.0  ;;  %v2499_v56 = vpop.f32.mrb[8].mxu0  ;;  %v3168_v3 = vpop.f32.mrb[8].mxu1 }
  0xff   : > { %v1192_v58 = vadd.f32 %v1191_v55, %v1190_v52  ;;  %916 = vst.msk [vmem:[#allocation6 + $0x48] sm:$0xff] %vm327_vm0, %v2499_v56  ;;  %v626_v59 = vpop.f32.mrb[9].mxu0  ;;  %v993_v60 = vadd.f32 %v992_v54, %v991_v51  ;;  %v1125_v62 = vmul.f32 %v2499_v56, %v2499_v56  ;;  %v996_v4 = vsel %vm327_vm0, %v2499_v56, 0.0  ;;  %948 = vst.msk [vmem:[#allocation6 + $0x148] sm:$0xff] %vm327_vm0, %v3168_v3  ;;  %v3174_v7 = vpop.f32.mrb[9].mxu1 }
 0x100   : > { %915 = vst.msk [vmem:[#allocation6 + $0x40] sm:$0xff] %vm327_vm0, %v626_v59  ;;  %v994_v63 = vsel %vm327_vm0, %v626_v59, 0.0  ;;  %v1124_v0 = vmul.f32 %v626_v59, %v626_v59  ;;  %947 = vst.msk [vmem:[#allocation6 + $0x140] sm:$0xff] %vm327_vm0, %v3174_v7 }
 0x101   : > { %v995_v1 = vadd.f32 %v994_v63, %v993_v60  ;;  %v1194_v2 = vadd.f32 %v1193_v61, %v1192_v58  ;;  %v1197_v11 = vsel %vm327_vm0, %v1125_v62, 0.0 }
 0x102   : > { %v1195_v5 = vsel %vm327_vm0, %v1124_v0, 0.0  ;;  %v2502_v6 = vpop.f32.mrb[10].mxu0  ;;  %v3182_v19 = vpop.f32.mrb[10].mxu1 }
 0x103   : > { %v1196_v8 = vadd.f32 %v1195_v5, %v1194_v2  ;;  %918 = vst.msk [vmem:[#allocation6 + $0x58] sm:$0xff] %vm327_vm0, %v2502_v6  ;;  %v636_v9 = vpop.f32.mrb[11].mxu0  ;;  %v997_v10 = vadd.f32 %v996_v4, %v995_v1  ;;  %v1127_v12 = vmul.f32 %v2502_v6, %v2502_v6  ;;  %v1000_v20 = vsel %vm327_vm0, %v2502_v6, 0.0  ;;  %950 = vst.msk [vmem:[#allocation6 + $0x158] sm:$0xff] %vm327_vm0, %v3182_v19  ;;  %v3188_v23 = vpop.f32.mrb[11].mxu1 }
 0x104   : > { %917 = vst.msk [vmem:[#allocation6 + $0x50] sm:$0xff] %vm327_vm0, %v636_v9  ;;  %v998_v13 = vsel %vm327_vm0, %v636_v9, 0.0  ;;  %v1126_v14 = vmul.f32 %v636_v9, %v636_v9  ;;  %949 = vst.msk [vmem:[#allocation6 + $0x150] sm:$0xff] %vm327_vm0, %v3188_v23 }
 0x105   : > { %v999_v16 = vadd.f32 %v998_v13, %v997_v10  ;;  %v1198_v17 = vadd.f32 %v1197_v11, %v1196_v8  ;;  %v1201_v28 = vsel %vm327_vm0, %v1127_v12, 0.0 }
 0x106   : > { %v1199_v21 = vsel %vm327_vm0, %v1126_v14, 0.0  ;;  %v2505_v22 = vpop.f32.mrb[12].mxu0  ;;  %v3196_v35 = vpop.f32.mrb[12].mxu1 }
 0x107   : > { %v1200_v24 = vadd.f32 %v1199_v21, %v1198_v17  ;;  %920 = vst.msk [vmem:[#allocation6 + $0x68] sm:$0xff] %vm327_vm0, %v2505_v22  ;;  %v646_v26 = vpop.f32.mrb[13].mxu0  ;;  %v1001_v27 = vadd.f32 %v1000_v20, %v999_v16  ;;  %v1129_v30 = vmul.f32 %v2505_v22, %v2505_v22  ;;  %v1004_v36 = vsel %vm327_vm0, %v2505_v22, 0.0  ;;  %952 = vst.msk [vmem:[#allocation6 + $0x168] sm:$0xff] %vm327_vm0, %v3196_v35  ;;  %v3202_v40 = vpop.f32.mrb[13].mxu1 }
 0x108   : > { %919 = vst.msk [vmem:[#allocation6 + $0x60] sm:$0xff] %vm327_vm0, %v646_v26  ;;  %v1002_v31 = vsel %vm327_vm0, %v646_v26, 0.0  ;;  %v1128_v32 = vmul.f32 %v646_v26, %v646_v26  ;;  %951 = vst.msk [vmem:[#allocation6 + $0x160] sm:$0xff] %vm327_vm0, %v3202_v40 }
 0x109   : > { %v1003_v33 = vadd.f32 %v1002_v31, %v1001_v27  ;;  %v1202_v34 = vadd.f32 %v1201_v28, %v1200_v24  ;;  %v1205_v45 = vsel %vm327_vm0, %v1129_v30, 0.0 }
 0x10a   : > { %v1203_v37 = vsel %vm327_vm0, %v1128_v32, 0.0  ;;  %v2508_v38 = vpop.f32.mrb[14].mxu0  ;;  %v3210_v51 = vpop.f32.mrb[14].mxu1 }
 0x10b   : > { %v1204_v41 = vadd.f32 %v1203_v37, %v1202_v34  ;;  %922 = vst.msk [vmem:[#allocation6 + $0x78] sm:$0xff] %vm327_vm0, %v2508_v38  ;;  %v656_v42 = vpop.f32.mrb[15].mxu0  ;;  %v1005_v44 = vadd.f32 %v1004_v36, %v1003_v33  ;;  %v1131_v46 = vmul.f32 %v2508_v38, %v2508_v38  ;;  %v1008_v52 = vsel %vm327_vm0, %v2508_v38, 0.0  ;;  %954 = vst.msk [vmem:[#allocation6 + $0x178] sm:$0xff] %vm327_vm0, %v3210_v51  ;;  %v3216_v56 = vpop.f32.mrb[15].mxu1 }
 0x10c   : > { %921 = vst.msk [vmem:[#allocation6 + $0x70] sm:$0xff] %vm327_vm0, %v656_v42  ;;  %v1006_v47 = vsel %vm327_vm0, %v656_v42, 0.0  ;;  %v1130_v48 = vmul.f32 %v656_v42, %v656_v42  ;;  %953 = vst.msk [vmem:[#allocation6 + $0x170] sm:$0xff] %vm327_vm0, %v3216_v56 }
 0x10d   : > { %v1007_v49 = vadd.f32 %v1006_v47, %v1005_v44  ;;  %v1206_v50 = vadd.f32 %v1205_v45, %v1204_v41  ;;  %v1209_v61 = vsel %vm327_vm0, %v1131_v46, 0.0 }
 0x10e   : > { %v1207_v54 = vsel %vm327_vm0, %v1130_v48, 0.0  ;;  %v2511_v55 = vpop.f32.mrb[16].mxu0  ;;  %v3224_v4 = vpop.f32.mrb[16].mxu1 }
 0x10f   : > { %v1208_v58 = vadd.f32 %v1207_v54, %v1206_v50  ;;  %924 = vst.msk [vmem:[#allocation6 + $0x88] sm:$0xff] %vm327_vm0, %v2511_v55  ;;  %v666_v59 = vpop.f32.mrb[17].mxu0  ;;  %v1009_v60 = vadd.f32 %v1008_v52, %v1007_v49  ;;  %v1133_v62 = vmul.f32 %v2511_v55, %v2511_v55  ;;  %v1012_v5 = vsel %vm327_vm0, %v2511_v55, 0.0  ;;  %956 = vst.msk [vmem:[#allocation6 + $0x188] sm:$0xff] %vm327_vm0, %v3224_v4  ;;  %v3230_v9 = vpop.f32.mrb[17].mxu1 }
 0x110   : > { %923 = vst.msk [vmem:[#allocation6 + $0x80] sm:$0xff] %vm327_vm0, %v666_v59  ;;  %v1010_v63 = vsel %vm327_vm0, %v666_v59, 0.0  ;;  %v1132_v0 = vmul.f32 %v666_v59, %v666_v59  ;;  %955 = vst.msk [vmem:[#allocation6 + $0x180] sm:$0xff] %vm327_vm0, %v3230_v9 }
 0x111   : > { %v1011_v1 = vadd.f32 %v1010_v63, %v1009_v60  ;;  %v1210_v2 = vadd.f32 %v1209_v61, %v1208_v58  ;;  %v1213_v13 = vsel %vm327_vm0, %v1133_v62, 0.0 }
 0x112   : > { %v1211_v6 = vsel %vm327_vm0, %v1132_v0, 0.0  ;;  %v2514_v8 = vpop.f32.mrb[18].mxu0  ;;  %v3238_v22 = vpop.f32.mrb[18].mxu1 }
 0x113   : > { %v1212_v10 = vadd.f32 %v1211_v6, %v1210_v2  ;;  %926 = vst.msk [vmem:[#allocation6 + $0x98] sm:$0xff] %vm327_vm0, %v2514_v8  ;;  %v676_v11 = vpop.f32.mrb[19].mxu0  ;;  %v1013_v12 = vadd.f32 %v1012_v5, %v1011_v1  ;;  %v1135_v14 = vmul.f32 %v2514_v8, %v2514_v8  ;;  %v1016_v24 = vsel %vm327_vm0, %v2514_v8, 0.0  ;;  %958 = vst.msk [vmem:[#allocation6 + $0x198] sm:$0xff] %vm327_vm0, %v3238_v22  ;;  %v3244_v28 = vpop.f32.mrb[19].mxu1 }
 0x114   : > { %925 = vst.msk [vmem:[#allocation6 + $0x90] sm:$0xff] %vm327_vm0, %v676_v11  ;;  %v1014_v16 = vsel %vm327_vm0, %v676_v11, 0.0  ;;  %v1134_v17 = vmul.f32 %v676_v11, %v676_v11  ;;  %957 = vst.msk [vmem:[#allocation6 + $0x190] sm:$0xff] %vm327_vm0, %v3244_v28 }
 0x115   : > { %v1015_v20 = vadd.f32 %v1014_v16, %v1013_v12  ;;  %v1214_v21 = vadd.f32 %v1213_v13, %v1212_v10  ;;  %v1217_v33 = vsel %vm327_vm0, %v1135_v14, 0.0 }
 0x116   : > { %v1215_v26 = vsel %vm327_vm0, %v1134_v17, 0.0  ;;  %v2517_v27 = vpop.f32.mrb[20].mxu0  ;;  %v3252_v42 = vpop.f32.mrb[20].mxu1 }
 0x117   : > { %v1216_v30 = vadd.f32 %v1215_v26, %v1214_v21  ;;  %928 = vst.msk [vmem:[#allocation6 + $0xa8] sm:$0xff] %vm327_vm0, %v2517_v27  ;;  %v686_v31 = vpop.f32.mrb[21].mxu0  ;;  %v1017_v32 = vadd.f32 %v1016_v24, %v1015_v20  ;;  %v1137_v34 = vmul.f32 %v2517_v27, %v2517_v27  ;;  %v1020_v44 = vsel %vm327_vm0, %v2517_v27, 0.0  ;;  %960 = vst.msk [vmem:[#allocation6 + $0x1a8] sm:$0xff] %vm327_vm0, %v3252_v42  ;;  %v3258_v47 = vpop.f32.mrb[21].mxu1 }
 0x118   : > { %927 = vst.msk [vmem:[#allocation6 + $0xa0] sm:$0xff] %vm327_vm0, %v686_v31  ;;  %v1018_v36 = vsel %vm327_vm0, %v686_v31, 0.0  ;;  %v1136_v37 = vmul.f32 %v686_v31, %v686_v31  ;;  %959 = vst.msk [vmem:[#allocation6 + $0x1a0] sm:$0xff] %vm327_vm0, %v3258_v47 }
 0x119   : > { %v1019_v38 = vadd.f32 %v1018_v36, %v1017_v32  ;;  %v1218_v41 = vadd.f32 %v1217_v33, %v1216_v30  ;;  %v1221_v52 = vsel %vm327_vm0, %v1137_v34, 0.0 }
 0x11a   : > { %v1219_v45 = vsel %vm327_vm0, %v1136_v37, 0.0  ;;  %v2520_v46 = vpop.f32.mrb[22].mxu0  ;;  %v3266_v61 = vpop.f32.mrb[22].mxu1 }
 0x11b   : > { %v1220_v48 = vadd.f32 %v1219_v45, %v1218_v41  ;;  %930 = vst.msk [vmem:[#allocation6 + $0xb8] sm:$0xff] %vm327_vm0, %v2520_v46  ;;  %v696_v49 = vpop.f32.mrb[23].mxu0  ;;  %v1021_v50 = vadd.f32 %v1020_v44, %v1019_v38  ;;  %v1139_v54 = vmul.f32 %v2520_v46, %v2520_v46  ;;  %v1024_v62 = vsel %vm327_vm0, %v2520_v46, 0.0  ;;  %962 = vst.msk [vmem:[#allocation6 + $0x1b8] sm:$0xff] %vm327_vm0, %v3266_v61  ;;  %v3272_v1 = vpop.f32.mrb[23].mxu1 }
 0x11c   : > { %929 = vst.msk [vmem:[#allocation6 + $0xb0] sm:$0xff] %vm327_vm0, %v696_v49  ;;  %v1022_v55 = vsel %vm327_vm0, %v696_v49, 0.0  ;;  %v1138_v58 = vmul.f32 %v696_v49, %v696_v49  ;;  %961 = vst.msk [vmem:[#allocation6 + $0x1b0] sm:$0xff] %vm327_vm0, %v3272_v1 }
 0x11d   : > { %v1023_v59 = vadd.f32 %v1022_v55, %v1021_v50  ;;  %v1222_v60 = vadd.f32 %v1221_v52, %v1220_v48  ;;  %v1225_v8 = vsel %vm327_vm0, %v1139_v54, 0.0 }
 0x11e   : > { %v1223_v63 = vsel %vm327_vm0, %v1138_v58, 0.0  ;;  %v2523_v0 = vpop.f32.mrb[24].mxu0  ;;  %v3280_v16 = vpop.f32.mrb[24].mxu1 }
 0x11f   : > { %v1224_v2 = vadd.f32 %v1223_v63, %v1222_v60  ;;  %932 = vst.msk [vmem:[#allocation6 + $0xc8] sm:$0xff] %vm327_vm0, %v2523_v0  ;;  %v706_v5 = vpop.f32.mrb[25].mxu0  ;;  %v1025_v6 = vadd.f32 %v1024_v62, %v1023_v59  ;;  %v1141_v10 = vmul.f32 %v2523_v0, %v2523_v0  ;;  %v1028_v17 = vsel %vm327_vm0, %v2523_v0, 0.0  ;;  %964 = vst.msk [vmem:[#allocation6 + $0x1c8] sm:$0xff] %vm327_vm0, %v3280_v16  ;;  %v3286_v24 = vpop.f32.mrb[25].mxu1 }
 0x120   : > { %931 = vst.msk [vmem:[#allocation6 + $0xc0] sm:$0xff] %vm327_vm0, %v706_v5  ;;  %v1026_v11 = vsel %vm327_vm0, %v706_v5, 0.0  ;;  %v1140_v12 = vmul.f32 %v706_v5, %v706_v5  ;;  %963 = vst.msk [vmem:[#allocation6 + $0x1c0] sm:$0xff] %vm327_vm0, %v3286_v24 }
 0x121   : > { %v1027_v13 = vadd.f32 %v1026_v11, %v1025_v6  ;;  %v1226_v14 = vadd.f32 %v1225_v8, %v1224_v2  ;;  %v1229_v31 = vsel %vm327_vm0, %v1141_v10, 0.0  ;;  %v1148_v11 = vmul.f32 %v3119_v18, %v3119_v18 }
 0x122   : > { %v1227_v20 = vsel %vm327_vm0, %v1140_v12, 0.0  ;;  %v2526_v21 = vpop.f32.mrb[26].mxu0  ;;  %v3294_v38 = vpop.f32.mrb[26].mxu1 }
 0x123   : > { %v1228_v26 = vadd.f32 %v1227_v20, %v1226_v14  ;;  %934 = vst.msk [vmem:[#allocation6 + $0xd8] sm:$0xff] %vm327_vm0, %v2526_v21  ;;  %v716_v27 = vpop.f32.mrb[27].mxu0  ;;  %v1029_v30 = vadd.f32 %v1028_v17, %v1027_v13  ;;  %v1143_v32 = vmul.f32 %v2526_v21, %v2526_v21  ;;  %v1032_v41 = vsel %vm327_vm0, %v2526_v21, 0.0  ;;  %966 = vst.msk [vmem:[#allocation6 + $0x1d8] sm:$0xff] %vm327_vm0, %v3294_v38  ;;  %v3300_v46 = vpop.f32.mrb[27].mxu1 }
 0x124   : > { %933 = vst.msk [vmem:[#allocation6 + $0xd0] sm:$0xff] %vm327_vm0, %v716_v27  ;;  %v1030_v33 = vsel %vm327_vm0, %v716_v27, 0.0  ;;  %v1142_v34 = vmul.f32 %v716_v27, %v716_v27  ;;  %965 = vst.msk [vmem:[#allocation6 + $0x1d0] sm:$0xff] %vm327_vm0, %v3300_v46 }
 0x125   : > { %v1031_v36 = vadd.f32 %v1030_v33, %v1029_v30  ;;  %v1230_v37 = vadd.f32 %v1229_v31, %v1228_v26  ;;  %v1233_v52 = vsel %vm327_vm0, %v1143_v32, 0.0  ;;  %v1042_v31 = vsel %vm327_vm0, %v3119_v18, 0.0 }
 0x126   : > { %v1231_v44 = vsel %vm327_vm0, %v1142_v34, 0.0  ;;  %v2529_v45 = vpop.f32.mrb[28].mxu0  ;;  %v3308_v62 = vpop.f32.mrb[28].mxu1  ;;  %v1150_v18 = vmul.f32 %v3132_v29, %v3132_v29 }
 0x127   : > { %v1232_v48 = vadd.f32 %v1231_v44, %v1230_v37  ;;  %936 = vst.msk [vmem:[#allocation6 + $0xe8] sm:$0xff] %vm327_vm0, %v2529_v45  ;;  %v726_v49 = vpop.f32.mrb[29].mxu0  ;;  %v1033_v50 = vadd.f32 %v1032_v41, %v1031_v36  ;;  %v1145_v54 = vmul.f32 %v2529_v45, %v2529_v45  ;;  %v1036_v63 = vsel %vm327_vm0, %v2529_v45, 0.0  ;;  %968 = vst.msk [vmem:[#allocation6 + $0x1e8] sm:$0xff] %vm327_vm0, %v3308_v62  ;;  %v3314_v5 = vpop.f32.mrb[29].mxu1 }
 0x128   : > { %935 = vst.msk [vmem:[#allocation6 + $0xe0] sm:$0xff] %vm327_vm0, %v726_v49  ;;  %v1034_v55 = vsel %vm327_vm0, %v726_v49, 0.0  ;;  %v1144_v58 = vmul.f32 %v726_v49, %v726_v49  ;;  %967 = vst.msk [vmem:[#allocation6 + $0x1e0] sm:$0xff] %vm327_vm0, %v3314_v5  ;;  %v1149_v37 = vmul.f32 %v3114_v15, %v3114_v15  ;;  %v1243_v41 = vsel %vm327_vm0, %v1148_v11, 0.0 }
 0x129   : > { %v1035_v59 = vadd.f32 %v1034_v55, %v1033_v50  ;;  %v1234_v60 = vadd.f32 %v1233_v52, %v1232_v48  ;;  %v1237_v12 = vsel %vm327_vm0, %v1145_v54, 0.0  ;;  %v1044_v48 = vsel %vm327_vm0, %v3114_v15, 0.0 }
 0x12a   : > { %v1235_v0 = vsel %vm327_vm0, %v1144_v58, 0.0  ;;  %v2532_v2 = vpop.f32.mrb[30].mxu0  ;;  %v3324_v26 = vpop.f32.mrb[30].mxu1  ;;  %v1046_v49 = vsel %vm327_vm0, %v3132_v29, 0.0  ;;  %v1245_v54 = vsel %vm327_vm0, %v1149_v37, 0.0  ;;  %v1151_v55 = vmul.f32 %v3126_v25, %v3126_v25 }
 0x12b   : > { %v1236_v6 = vadd.f32 %v1235_v0, %v1234_v60  ;;  %938 = vst.msk [vmem:[#allocation6 + $0xf8] sm:$0xff] %vm327_vm0, %v2532_v2  ;;  %v736_v8 = vpop.f32.mrb[31].mxu0  ;;  %v1037_v10 = vadd.f32 %v1036_v63, %v1035_v59  ;;  %v1147_v13 = vmul.f32 %v2532_v2, %v2532_v2  ;;  %v1040_v27 = vsel %vm327_vm0, %v2532_v2, 0.0  ;;  %970 = vst.msk [vmem:[#allocation6 + $0x1f8] sm:$0xff] %vm327_vm0, %v3324_v26  ;;  %v3332_v32 = vpop.f32.mrb[31].mxu1 }
 0x12c   : > { %937 = vst.msk [vmem:[#allocation6 + $0xf0] sm:$0xff] %vm327_vm0, %v736_v8  ;;  %v1038_v14 = vsel %vm327_vm0, %v736_v8, 0.0  ;;  %v1146_v17 = vmul.f32 %v736_v8, %v736_v8  ;;  %969 = vst.msk [vmem:[#allocation6 + $0x1f0] sm:$0xff] %vm327_vm0, %v3332_v32  ;;  %v1247_v58 = vsel %vm327_vm0, %v1150_v18, 0.0  ;;  %v1152_v59 = vmul.f32 %v3146_v43, %v3146_v43 }
 0x12d   : > { %v1039_v20 = vadd.f32 %v1038_v14, %v1037_v10  ;;  %v1238_v21 = vadd.f32 %v1237_v12, %v1236_v6  ;;  %v1241_v36 = vsel %vm327_vm0, %v1147_v13, 0.0  ;;  %v1048_v15 = vsel %vm327_vm0, %v3126_v25, 0.0 }
 0x12e   : > { %v1239_v30 = vsel %vm327_vm0, %v1146_v17, 0.0  ;;  %v1050_v29 = vsel %vm327_vm0, %v3146_v43, 0.0  ;;  %v1249_v6 = vsel %vm327_vm0, %v1151_v55, 0.0  ;;  %v1153_v8 = vmul.f32 %v3140_v39, %v3140_v39 }
 0x12f   : > { %v1041_v33 = vadd.f32 %v1040_v27, %v1039_v20  ;;  %v1240_v34 = vadd.f32 %v1239_v30, %v1238_v21  ;;  %v1251_v10 = vsel %vm327_vm0, %v1152_v59, 0.0  ;;  %v1154_v11 = vmul.f32 %v3160_v57, %v3160_v57 }
 0x130   : > { %v1052_v25 = vsel %vm327_vm0, %v3140_v39, 0.0  ;;  %v1054_v43 = vsel %vm327_vm0, %v3160_v57, 0.0  ;;  %v1253_v20 = vsel %vm327_vm0, %v1153_v8, 0.0  ;;  %v1155_v21 = vmul.f32 %v3154_v53, %v3154_v53 }
 0x131   : > { %v1242_v44 = vadd.f32 %v1241_v36, %v1240_v34  ;;  %v1043_v45 = vadd.f32 %v1042_v31, %v1041_v33  ;;  %v1255_v27 = vsel %vm327_vm0, %v1154_v11, 0.0  ;;  %v1156_v30 = vmul.f32 %v3174_v7, %v3174_v7 }
 0x132   : > { %v1056_v39 = vsel %vm327_vm0, %v3154_v53, 0.0  ;;  %v1058_v57 = vsel %vm327_vm0, %v3174_v7, 0.0  ;;  %v1257_v37 = vsel %vm327_vm0, %v1155_v21, 0.0  ;;  %v1060_v53 = vsel %vm327_vm0, %v3168_v3, 0.0 }
 0x133   : > { %v1244_v50 = vadd.f32 %v1243_v41, %v1242_v44  ;;  %v1045_v52 = vadd.f32 %v1044_v48, %v1043_v45  ;;  %v1157_v41 = vmul.f32 %v3168_v3, %v3168_v3  ;;  %v1259_v18 = vsel %vm327_vm0, %v1156_v30, 0.0 }
 0x134   : > { %v1158_v44 = vmul.f32 %v3188_v23, %v3188_v23  ;;  %v1062_v7 = vsel %vm327_vm0, %v3188_v23, 0.0  ;;  %v1064_v3 = vsel %vm327_vm0, %v3182_v19, 0.0  ;;  %v1066_v23 = vsel %vm327_vm0, %v3202_v40, 0.0 }
 0x135   : > { %v1047_v60 = vadd.f32 %v1046_v49, %v1045_v52  ;;  %v1246_v63 = vadd.f32 %v1245_v54, %v1244_v50  ;;  %v1261_v52 = vsel %vm327_vm0, %v1157_v41, 0.0  ;;  %v1159_v54 = vmul.f32 %v3182_v19, %v3182_v19 }
 0x136   : > { %v1263_v55 = vsel %vm327_vm0, %v1158_v44, 0.0  ;;  %v1068_v19 = vsel %vm327_vm0, %v3196_v35, 0.0 }
 0x137   : > { %v1248_v0 = vadd.f32 %v1247_v58, %v1246_v63  ;;  %v1049_v2 = vadd.f32 %v1048_v15, %v1047_v60  ;;  %v1160_v58 = vmul.f32 %v3202_v40, %v3202_v40  ;;  %v1070_v40 = vsel %vm327_vm0, %v3216_v56, 0.0 }
 0x139   : > { %v1051_v12 = vadd.f32 %v1050_v29, %v1049_v2  ;;  %v1250_v13 = vadd.f32 %v1249_v6, %v1248_v0  ;;  %v1265_v29 = vsel %vm327_vm0, %v1159_v54, 0.0  ;;  %v1161_v0 = vmul.f32 %v3196_v35, %v3196_v35 }
 0x13a   : > { %v1267_v2 = vsel %vm327_vm0, %v1160_v58, 0.0  ;;  %v1162_v6 = vmul.f32 %v3216_v56, %v3216_v56  ;;  %v1072_v35 = vsel %vm327_vm0, %v3210_v51, 0.0  ;;  %v1074_v56 = vsel %vm327_vm0, %v3230_v9, 0.0 }
 0x13b   : > { %v1252_v14 = vadd.f32 %v1251_v10, %v1250_v13  ;;  %v1053_v17 = vadd.f32 %v1052_v25, %v1051_v12  ;;  %v1269_v13 = vsel %vm327_vm0, %v1161_v0, 0.0  ;;  %v1163_v25 = vmul.f32 %v3210_v51, %v3210_v51 }
 0x13c   : > { %v1076_v51 = vsel %vm327_vm0, %v3224_v4, 0.0 }
 0x13d   : > { %v1055_v31 = vadd.f32 %v1054_v43, %v1053_v17  ;;  %v1254_v33 = vadd.f32 %v1253_v20, %v1252_v14  ;;  %v1271_v43 = vsel %vm327_vm0, %v1162_v6, 0.0  ;;  %v1164_v14 = vmul.f32 %v3230_v9, %v3230_v9 }
 0x13e   : > { %v1273_v30 = vsel %vm327_vm0, %v1163_v25, 0.0  ;;  %v1078_v9 = vsel %vm327_vm0, %v3244_v28, 0.0 }
 0x13f   : > { %v1256_v34 = vadd.f32 %v1255_v27, %v1254_v33  ;;  %v1057_v36 = vadd.f32 %v1056_v39, %v1055_v31  ;;  %v1165_v31 = vmul.f32 %v3224_v4, %v3224_v4  ;;  %v1275_v33 = vsel %vm327_vm0, %v1164_v14, 0.0 }
 0x140   : > { %v1166_v39 = vmul.f32 %v3244_v28, %v3244_v28  ;;  %v1080_v4 = vsel %vm327_vm0, %v3238_v22, 0.0  ;;  %v1082_v28 = vsel %vm327_vm0, %v3258_v47, 0.0 }
 0x141   : > { %v1059_v45 = vadd.f32 %v1058_v57, %v1057_v36  ;;  %v1258_v48 = vadd.f32 %v1257_v37, %v1256_v34  ;;  %v1277_v41 = vsel %vm327_vm0, %v1165_v31, 0.0 }
 0x142   : > { %v1279_v44 = vsel %vm327_vm0, %v1166_v39, 0.0 }
 0x143   : > { %v1260_v49 = vadd.f32 %v1259_v18, %v1258_v48  ;;  %v1061_v50 = vadd.f32 %v1060_v53, %v1059_v45  ;;  %v1167_v18 = vmul.f32 %v3238_v22, %v3238_v22  ;;  %v1168_v45 = vmul.f32 %v3258_v47, %v3258_v47 }
 0x144   : > { %v1084_v22 = vsel %vm327_vm0, %v3252_v42, 0.0  ;;  %v1086_v47 = vsel %vm327_vm0, %v3272_v1, 0.0 }
 0x145   : > { %v1063_v59 = vadd.f32 %v1062_v7, %v1061_v50  ;;  %v1262_v60 = vadd.f32 %v1261_v52, %v1260_v49  ;;  %v1281_v50 = vsel %vm327_vm0, %v1167_v18, 0.0  ;;  %v1169_v52 = vmul.f32 %v3252_v42, %v3252_v42 }
 0x146   : > { %v1283_v54 = vsel %vm327_vm0, %v1168_v45, 0.0  ;;  %v1088_v42 = vsel %vm327_vm0, %v3266_v61, 0.0 }
 0x147   : > { %v1264_v63 = vadd.f32 %v1263_v55, %v1262_v60  ;;  %v1065_v15 = vadd.f32 %v1064_v3, %v1063_v59  ;;  %v1170_v55 = vmul.f32 %v3272_v1, %v3272_v1  ;;  %v1090_v1 = vsel %vm327_vm0, %v3286_v24, 0.0 }
 0x149   : > { %v1067_v8 = vadd.f32 %v1066_v23, %v1065_v15  ;;  %v1266_v10 = vadd.f32 %v1265_v29, %v1264_v63  ;;  %v1285_v23 = vsel %vm327_vm0, %v1169_v52, 0.0  ;;  %v1171_v63 = vmul.f32 %v3266_v61, %v3266_v61 }
 0x14a   : > { %v1287_v15 = vsel %vm327_vm0, %v1170_v55, 0.0  ;;  %v1172_v29 = vmul.f32 %v3286_v24, %v3286_v24  ;;  %v1092_v61 = vsel %vm327_vm0, %v3280_v16, 0.0  ;;  %v1094_v24 = vsel %vm327_vm0, %v3300_v46, 0.0 }
 0x14b   : > { %v1268_v11 = vadd.f32 %v1267_v2, %v1266_v10  ;;  %v1069_v12 = vadd.f32 %v1068_v19, %v1067_v8  ;;  %v1289_v10 = vsel %vm327_vm0, %v1171_v63, 0.0  ;;  %v1173_v19 = vmul.f32 %v3280_v16, %v3280_v16 }
 0x14c   : > { %v1096_v16 = vsel %vm327_vm0, %v3294_v38, 0.0 }
 0x14d   : > { %v1071_v17 = vadd.f32 %v1070_v40, %v1069_v12  ;;  %v1270_v20 = vadd.f32 %v1269_v13, %v1268_v11  ;;  %v1291_v40 = vsel %vm327_vm0, %v1172_v29, 0.0  ;;  %v1174_v11 = vmul.f32 %v3300_v46, %v3300_v46 }
 0x14e   : > { %v1293_v14 = vsel %vm327_vm0, %v1173_v19, 0.0  ;;  %v1098_v46 = vsel %vm327_vm0, %v3314_v5, 0.0 }
 0x14f   : > { %v1272_v21 = vadd.f32 %v1271_v43, %v1270_v20  ;;  %v1073_v27 = vadd.f32 %v1072_v35, %v1071_v17  ;;  %v1175_v17 = vmul.f32 %v3294_v38, %v3294_v38  ;;  %v1295_v20 = vsel %vm327_vm0, %v1174_v11, 0.0 }
 0x150   : > { %v1176_v35 = vmul.f32 %v3314_v5, %v3314_v5  ;;  %v1100_v38 = vsel %vm327_vm0, %v3308_v62, 0.0  ;;  %v1102_v5 = vsel %vm327_vm0, %v3332_v32, 0.0 }
 0x151   : > { %v1075_v57 = vadd.f32 %v1074_v56, %v1073_v27  ;;  %v1274_v34 = vadd.f32 %v1273_v30, %v1272_v21  ;;  %v1297_v31 = vsel %vm327_vm0, %v1175_v17, 0.0 }
 0x152   : > { %v1299_v39 = vsel %vm327_vm0, %v1176_v35, 0.0 }
 0x153   : > { %v1276_v36 = vadd.f32 %v1275_v33, %v1274_v34  ;;  %v1077_v37 = vadd.f32 %v1076_v51, %v1075_v57  ;;  %v1177_v33 = vmul.f32 %v3308_v62, %v3308_v62  ;;  %v1178_v57 = vmul.f32 %v3332_v32, %v3332_v32 }
 0x155   : > { %v1079_v48 = vadd.f32 %v1078_v9, %v1077_v37  ;;  %v1278_v53 = vadd.f32 %v1277_v41, %v1276_v36  ;;  %v1301_v37 = vsel %vm327_vm0, %v1177_v33, 0.0  ;;  %v1179_v41 = vmul.f32 %v3324_v26, %v3324_v26 }
 0x156   : > { %v1303_v18 = vsel %vm327_vm0, %v1178_v57, 0.0 }
 0x157   : > { %v1280_v7 = vadd.f32 %v1279_v44, %v1278_v53  ;;  %v1081_v49 = vadd.f32 %v1080_v4, %v1079_v48  ;;  %v1104_v48 = vsel %vm327_vm0, %v3324_v26, 0.0  ;;  %v1305_v62 = vsel %vm327_vm0, %v1179_v41, 0.0 }
 0x159   : > { %v1083_v58 = vadd.f32 %v1082_v28, %v1081_v49  ;;  %v1282_v59 = vadd.f32 %v1281_v50, %v1280_v7 }
 0x15b   : > { %v1284_v60 = vadd.f32 %v1283_v54, %v1282_v59  ;;  %v1085_v3 = vadd.f32 %v1084_v22, %v1083_v58  ;;  %v978_v22 = vld [vmem:[#allocation2] sm:$0x1] }
 0x15d   : > { %v1087_v0 = vadd.f32 %v1086_v47, %v1085_v3  ;;  %v1286_v2 = vadd.f32 %v1285_v23, %v1284_v60  ;;  %v1115_v3 = vld [vmem:[#allocation3] sm:$0x1] }
 0x15f   : > { %v1288_v6 = vadd.f32 %v1287_v15, %v1286_v2  ;;  %v1089_v8 = vadd.f32 %v1088_v42, %v1087_v0 }
 0x161   : > { %v1091_v12 = vadd.f32 %v1090_v1, %v1089_v8  ;;  %v1290_v13 = vadd.f32 %v1289_v10, %v1288_v6  ;;  %v1324_v8 = vld [vmem:[%s3758_s2] sm:$0x1] }
 0x163   : > { %v1292_v25 = vadd.f32 %v1291_v40, %v1290_v13  ;;  %v1093_v43 = vadd.f32 %v1092_v61, %v1091_v12  ;;  %v1329_v40 = vld [vmem:[%s3759_s3] sm:$0x1] }
 0x165   : > { %v1095_v56 = vadd.f32 %v1094_v24, %v1093_v43  ;;  %v1294_v21 = vadd.f32 %v1293_v14, %v1292_v25 }
 0x167   : > { %v1296_v27 = vadd.f32 %v1295_v20, %v1294_v21  ;;  %v1097_v30 = vadd.f32 %v1096_v16, %v1095_v56 }
 0x169   : > { %v1099_v34 = vadd.f32 %v1098_v46, %v1097_v30  ;;  %v1298_v51 = vadd.f32 %v1297_v31, %v1296_v27 }
 0x16b   : > { %v1300_v9 = vadd.f32 %v1299_v39, %v1298_v51  ;;  %v1101_v36 = vadd.f32 %v1100_v38, %v1099_v34 }
 0x16d   : > { %v1103_v44 = vadd.f32 %v1102_v5, %v1101_v36  ;;  %v1302_v45 = vadd.f32 %v1301_v37, %v1300_v9 }
 0x16f   : > { %v1105_v53 = vadd.f32 %v1104_v48, %v1103_v44  ;;  %v1304_v4 = vadd.f32 %v1303_v18, %v1302_v45 }
 0x171   : > { %v1106_v28 = vrot.slane %v1105_v53, 4  ;;  %v1306_v32 = vadd.f32 %v1305_v62, %v1304_v4 }
 0x173   : > { %v1107_v7 = vadd.f32 %v1106_v28, %v1105_v53  ;;  %v1307_v49 = vrot.slane %v1306_v32, 4 }
 0x175   : > { %v1108_v50 = vrot.slane %v1107_v7, 2  ;;  %v1308_v52 = vadd.f32 %v1307_v49, %v1306_v32 }
 0x177   : > { %v1109_v54 = vadd.f32 %v1108_v50, %v1107_v7  ;;  %v1309_v55 = vrot.slane %v1308_v52, 2 }
 0x179   : > { %v1110_v58 = vrot.slane %v1109_v54, 1  ;;  %v1310_v59 = vadd.f32 %v1309_v55, %v1308_v52 }
 0x17b   : > { %v1111_v47 = vadd.f32 %v1110_v58, %v1109_v54  ;;  %v1311_v60 = vrot.slane %v1310_v59, 1 }
 0x17d   : > { %v1112_v23 = vadd.f32 %v1111_v47, %v978_v22  ;;  %v1312_v26 = vadd.f32 %v1311_v60, %v1310_v59 }
 0x17f   : > { %1114 = vst.msk [vmem:[#allocation2] sm:$0x1] %vm975_vm1, %v1112_v23  ;;  %v1313_v63 = vadd.f32 %v1312_v26, %v1115_v3 }
 0x181   : > { %1314 = vst.msk [vmem:[#allocation3] sm:$0x1] %vm975_vm1, %v1313_v63 }
 0x186   : > { %v1318_v15 = vld [vmem:[#allocation2] sm:$0x1] }
 0x187   : > { %v1319_v29 = vmul.f32 0.001953125, %v1318_v15 }
 0x188   : > { %v1320_v0 = vld [vmem:[#allocation3] sm:$0x1] }
 0x189   : > { %v1321_v2 = vmul.f32 0.001953125, %v1320_v0  ;;  %v1322_v42 = vmul.f32 %v1319_v29, %v1319_v29 }
 0x18b   : > { %v1323_v1 = vsub.f32 %v1321_v2, %v1322_v42 }
 0x18d   : > { %v1325_v6 = vadd.f32 1e-05, %v1323_v1 }
 0x18f   : > { %2727 = vrsqrt.f32 %v1325_v6 }
 0x199   : > { %v2728_v10 = vpop.eup %2727 }
 0x19a   : > { %v1327_v19 = vmul.f32 %v2728_v10, %v1324_v8 }
 0x19c   : > { %1328 = vst.msk [vmem:[#allocation4] sm:$0x1] %vm975_vm1, %v1327_v19  ;;  %v1330_v11 = vmul.f32 %v1327_v19, %v1319_v29 }
 0x19e   : > { %v1331_v12 = vsub.f32 %v1329_v40, %v1330_v11 }
 0x1a0   : > { %1332 = vst.msk [vmem:[#allocation5] sm:$0x1] %vm975_vm1, %v1331_v12 }
 0x1a1 PF: > { %p2268_p5 = scmp.ne.s32.totalorder %s2773_s18, 1 }
 0x1a2   : > { %v1355_v13 = vld [vmem:[#allocation6 + $0x80] sm:$0xff] (!%p2268_p5)  ;;  %v1356_v61 = vld [vmem:[#allocation6 + $0x88] sm:$0xff] (!%p2268_p5)  ;;  %vm1738_vm2 = vcmask (!%p2268_p5), 261120   ;;  %v1357_v28 = vld [vmem:[#allocation6 + $0x90] sm:$0xff] (!%p2268_p5) }
 0x1a3   : > { %1336 = sbr.rel (%p2268_p5) target bundleno = 741 (0x2e5), region = 56  ;;  %v3504_v24 = vld [vmem:[#allocation4] ss:$0 sm:$0xff] (!%p2268_p5)  ;;  %v1387_v17 = vld [vmem:[#allocation6 + $0x180] sm:$0xff] (!%p2268_p5)  ;;  %v1388_v20 = vld [vmem:[#allocation6 + $0x188] sm:$0xff] (!%p2268_p5) }
 0x1a4   : > { %v1426_v25 = vmul.f32 (!%p2268_p5), %v3504_v24, %v1355_v13  ;;  %v1427_v43 = vmul.f32 (!%p2268_p5), %v3504_v24, %v1356_v61  ;;  %v1458_v35 = vmul.f32 (!%p2268_p5), %v3504_v24, %v1387_v17  ;;  %v1339_v56 = vld [vmem:[#allocation6] sm:$0xff] (!%p2268_p5)  ;;  %v1340_v21 = vld [vmem:[#allocation6 + $0x8] sm:$0xff] (!%p2268_p5)  ;;  %v1459_v27 = vmul.f32 (!%p2268_p5), %v3504_v24, %v1388_v20  ;;  %vm3523_vm6 = vmpackc.low (!%p2268_p5), %vm1738_vm2, %vm1738_vm2 }
 0x1a5   : > { %v1410_v30 = vmul.f32 (!%p2268_p5), %v3504_v24, %v1339_v56  ;;  %v1371_v31 = vld [vmem:[#allocation6 + $0x100] sm:$0xff] (!%p2268_p5)  ;;  %v1372_v33 = vld [vmem:[#allocation6 + $0x108] sm:$0xff] (!%p2268_p5)  ;;  %v1411_v57 = vmul.f32 (!%p2268_p5), %v3504_v24, %v1340_v21  ;;  %v1358_v54 = vld [vmem:[#allocation6 + $0x98] sm:$0xff] (!%p2268_p5)  ;;  %v1428_v60 = vmul.f32 (!%p2268_p5), %v3504_v24, %v1357_v28 }
 0x1a6   : > { %v1442_v34 = vmul.f32 (!%p2268_p5), %v3504_v24, %v1371_v31  ;;  %v1443_v51 = vmul.f32 (!%p2268_p5), %v3504_v24, %v1372_v33  ;;  %v1389_v55 = vld [vmem:[#allocation6 + $0x190] sm:$0xff] (!%p2268_p5)  ;;  %v1390_v58 = vld [vmem:[#allocation6 + $0x198] sm:$0xff] (!%p2268_p5)  ;;  %v1429_v0 = vmul.f32 (!%p2268_p5), %v3504_v24, %v1358_v54  ;;  %v1359_v21 = vld [vmem:[#allocation6 + $0xa0] sm:$0xff] (!%p2268_p5) }
 0x1a7   : > { %v3508_v14 = vld [vmem:[#allocation5] ss:$0 sm:$0xff] (!%p2268_p5)  ;;  %v1341_v3 = vld [vmem:[#allocation6 + $0x10] sm:$0xff] (!%p2268_p5)  ;;  %v1460_v42 = vmul.f32 (!%p2268_p5), %v3504_v24, %v1389_v55  ;;  %v1461_v1 = vmul.f32 (!%p2268_p5), %v3504_v24, %v1390_v58  ;;  %v1360_v31 = vld [vmem:[#allocation6 + $0xa8] sm:$0xff] (!%p2268_p5) }
 0x1a8   : > { %v1497_v16 = vadd.f32 (!%p2268_p5), %v3508_v14, %v1426_v25  ;;  %v1498_v46 = vadd.f32 (!%p2268_p5), %v3508_v14, %v1427_v43  ;;  %v1529_v39 = vadd.f32 (!%p2268_p5), %v3508_v14, %v1458_v35  ;;  %v1530_v9 = vadd.f32 (!%p2268_p5), %v3508_v14, %v1459_v27  ;;  %v1342_v23 = vld [vmem:[#allocation6 + $0x18] sm:$0xff] (!%p2268_p5)  ;;  %v1373_v26 = vld [vmem:[#allocation6 + $0x110] sm:$0xff] (!%p2268_p5)  ;;  %v1391_v33 = vld [vmem:[#allocation6 + $0x1a0] sm:$0xff] (!%p2268_p5) }
 0x1a9   : > { %v1481_v37 = vadd.f32 (!%p2268_p5), %v3508_v14, %v1410_v30  ;;  %v1482_v45 = vadd.f32 (!%p2268_p5), %v3508_v14, %v1411_v57  ;;  %v1513_v48 = vadd.f32 (!%p2268_p5), %v3508_v14, %v1442_v34  ;;  %v1514_v50 = vadd.f32 (!%p2268_p5), %v3508_v14, %v1443_v51  ;;  %v1374_v19 = vld [vmem:[#allocation6 + $0x118] sm:$0xff] (!%p2268_p5) }
 0x1aa   : > { %vm1561_vm3 = vcmp.ge.f32.partialorder %v1497_v16, 0.0  ;;  %vm1562_vm4 = vcmp.ge.f32.partialorder %v1498_v46, 0.0  ;;  %v1625_v38 = vmul.f32 0.2, %v1497_v16  ;;  %v1626_v5 = vmul.f32 0.2, %v1498_v46 }
 0x1ab   : > { %vm1593_vm5 = vcmp.ge.f32.partialorder %v1529_v39, 0.0  ;;  %v1657_v36 = vmul.f32 0.2, %v1529_v39  ;;  %vm1594_vm7 = vcmp.ge.f32.partialorder %v1530_v9, 0.0  ;;  %v1658_v4 = vmul.f32 0.2, %v1530_v9 }
 0x1ac   : > { %v1689_v41 = vsel %vm1561_vm3, %v1497_v16, %v1625_v38  ;;  %v1690_v18 = vsel %vm1562_vm4, %v1498_v46, %v1626_v5  ;;  %vm1545_vm8 = vcmp.ge.f32.partialorder %v1481_v37, 0.0  ;;  %vm1546_vm9 = vcmp.ge.f32.partialorder %v1482_v45, 0.0 }
 0x1ad   : > { %v2589_v53 = vpack.c.bf16 %v1690_v18, %v1689_v41  ;;  %v1721_v62 = vsel %vm1593_vm5, %v1529_v39, %v1657_v36  ;;  %v1609_v32 = vmul.f32 0.2, %v1481_v37  ;;  %v1610_v7 = vmul.f32 0.2, %v1482_v45 }
 0x1ae   : > { %v1722_v49 = vsel %vm1594_vm7, %v1530_v9, %v1658_v4  ;;  %vm1577_vm10 = vcmp.ge.f32.partialorder %v1513_v48, 0.0  ;;  %v1641_v52 = vmul.f32 0.2, %v1513_v48  ;;  %vm1578_vm11 = vcmp.ge.f32.partialorder %v1514_v50, 0.0  ;;  %v1344_v4 = vld [vmem:[#allocation6 + $0x28] sm:$0xff] }
 0x1af   : > { %2591 = vmatprep.subr.msk.bf16.mxu0 %vm3523_vm6, %v2589_v53  ;;  %v2637_v59 = vpack.c.bf16 %v1722_v49, %v1721_v62  ;;  %v1673_v22 = vsel %vm1545_vm8, %v1481_v37, %v1609_v32  ;;  %v1674_v47 = vsel %vm1546_vm9, %v1482_v45, %v1610_v7  ;;  %v1642_v15 = vmul.f32 0.2, %v1514_v50  ;;  %v1392_v37 = vld [vmem:[#allocation6 + $0x1a8] sm:$0xff]  ;;  %v1343_v53 = vld [vmem:[#allocation6 + $0x20] sm:$0xff] }
 0x1b0   : > { %v2592_v63 = vpack.c.bf16 %v1674_v47, %v1673_v22  ;;  %v1705_v29 = vsel %vm1577_vm10, %v1513_v48, %v1641_v52  ;;  %v1499_v2 = vadd.f32 %v3508_v14, %v1428_v60  ;;  %v1412_v8 = vmul.f32 %v3504_v24, %v1341_v3  ;;  %v3572_v60 = vld [vmem:[%s3760_s4] sm:$0x1] }
 0x1b1   : > { %2639 = vmatprep.subr.msk.bf16.mxu1 %vm3523_vm6, %v2637_v59  ;;  %v1706_v6 = vsel %vm1578_vm11, %v1514_v50, %v1642_v15  ;;  %v1413_v10 = vmul.f32 %v3504_v24, %v1342_v23  ;;  %v1444_v40 = vmul.f32 %v3504_v24, %v1373_v26  ;;  %v1500_v12 = vadd.f32 %v3508_v14, %v1429_v0  ;;  %v1375_v59 = vld [vmem:[#allocation6 + $0x120] sm:$0xff] }
 0x1b2   : > { %2594 = vmatpush3.bf16.xpose.msk.msra.mxu0 %vm3523_vm6, %v2592_v63  ;;  %v2640_v11 = vpack.c.bf16 %v1706_v6, %v1705_v29  ;;  %vm1563_vm12 = vcmp.ge.f32.partialorder %v1499_v2, 0.0  ;;  %v1627_v13 = vmul.f32 0.2, %v1499_v2  ;;  %v1531_v61 = vadd.f32 %v3508_v14, %v1460_v42  ;;  %2441 = vmatprep.mubr.msk.f32.mxu0 %vm1738_vm2, %v3572_v60 }
 0x1b3   : > { %v1532_v25 = vadd.f32 %v3508_v14, %v1461_v1  ;;  %v1483_v43 = vadd.f32 %v3508_v14, %v1412_v8  ;;  %v1484_v17 = vadd.f32 %v3508_v14, %v1413_v10  ;;  %vm1564_vm13 = vcmp.ge.f32.partialorder %v1500_v12, 0.0  ;;  %2475 = vmatprep.mubr.msk.f32.mxu1 %vm1738_vm2, %v3572_v60  ;;  %v1361_v8 = vld [vmem:[#allocation6 + $0xb0] sm:$0xff]  ;;  %v1362_v10 = vld [vmem:[#allocation6 + $0xb8] sm:$0xff] }
 0x1b4   : > { %2642 = vmatpush3.bf16.xpose.msk.msra.mxu1 %vm3523_vm6, %v2640_v11  ;;  %v1628_v20 = vmul.f32 0.2, %v1500_v12  ;;  %v1691_v35 = vsel %vm1563_vm12, %v1499_v2, %v1627_v13  ;;  %v1445_v56 = vmul.f32 %v3504_v24, %v1374_v19  ;;  %vm1595_vm14 = vcmp.ge.f32.partialorder %v1531_v61, 0.0  ;;  %v1376_v2 = vld [vmem:[#allocation6 + $0x128] sm:$0xff]  ;;  %v1393_v11 = vld [vmem:[#allocation6 + $0x1b0] sm:$0xff] }
 0x1b5   : > { %vm1596_vm15 = vcmp.ge.f32.partialorder %v1532_v25, 0.0  ;;  %v1659_v16 = vmul.f32 0.2, %v1531_v61  ;;  %v1660_v46 = vmul.f32 0.2, %v1532_v25  ;;  %vm1547_vm0 = vcmp.ge.f32.partialorder %v1483_v43, 0.0 }
 0x1b6   : > { %v1692_v27 = vsel %vm1564_vm13, %v1500_v12, %v1628_v20  ;;  %vm1548_vm1 = vcmp.ge.f32.partialorder %v1484_v17, 0.0  ;;  %v1611_v30 = vmul.f32 0.2, %v1483_v43  ;;  %v1612_v51 = vmul.f32 0.2, %v1484_v17 }
 0x1b7   : > { %v2595_v39 = vpack.c.bf16 %v1692_v27, %v1691_v35  ;;  %v1723_v57 = vsel %vm1595_vm14, %v1531_v61, %v1659_v16  ;;  %v1724_v34 = vsel %vm1596_vm15, %v1532_v25, %v1660_v46  ;;  %v1515_v9 = vadd.f32 %v3508_v14, %v1444_v40 }
 0x1b8   : > { %v2643_v38 = vpack.c.bf16 %v1724_v34, %v1723_v57  ;;  %v1675_v5 = vsel %vm1547_vm0, %v1483_v43, %v1611_v30  ;;  %v1516_v36 = vadd.f32 %v3508_v14, %v1445_v56  ;;  %v1676_v41 = vsel %vm1548_vm1, %v1484_v17, %v1612_v51  ;;  %v1394_v56 = vld [vmem:[#allocation6 + $0x1b8] sm:$0xff] }
 0x1b9   : > { %2597 = vmatprep.subr.msk.bf16.mxu0 %vm3523_vm6, %v2595_v39  ;;  %v1430_v18 = vmul.f32 %v3504_v24, %v1359_v21  ;;  %v1431_v45 = vmul.f32 %v3504_v24, %v1360_v31  ;;  %v1462_v48 = vmul.f32 %v3504_v24, %v1391_v33  ;;  %v2598_v62 = vpack.c.bf16 %v1676_v41, %v1675_v5 }
 0x1ba   : > { %2645 = vmatprep.subr.msk.bf16.mxu1 %vm3523_vm6, %v2643_v38  ;;  %vm1579_vm3 = vcmp.ge.f32.partialorder %v1515_v9, 0.0  ;;  %vm1580_vm4 = vcmp.ge.f32.partialorder %v1516_v36, 0.0  ;;  %v1643_v28 = vmul.f32 0.2, %v1515_v9  ;;  %v1644_v32 = vmul.f32 0.2, %v1516_v36 }
 0x1bb   : > { %v1501_v7 = vadd.f32 %v3508_v14, %v1430_v18  ;;  %v1502_v49 = vadd.f32 %v3508_v14, %v1431_v45  ;;  %v1463_v50 = vmul.f32 %v3504_v24, %v1392_v37  ;;  %2600 = vmatpush3.bf16.xpose.msk.msra.mxu0 %vm3523_vm6, %v2598_v62  ;;  %v1533_v54 = vadd.f32 %v3508_v14, %v1462_v48  ;;  %v1346_v18 = vld [vmem:[#allocation6 + $0x38] sm:$0xff]  ;;  %v1377_v45 = vld [vmem:[#allocation6 + $0x130] sm:$0xff] }
 0x1bc   : > { %v1707_v52 = vsel %vm1579_vm3, %v1515_v9, %v1643_v28  ;;  %v1414_v55 = vmul.f32 %v3504_v24, %v1343_v53  ;;  %v1415_v58 = vmul.f32 %v3504_v24, %v1344_v4  ;;  %v1708_v22 = vsel %vm1580_vm4, %v1516_v36, %v1644_v32  ;;  %v1345_v9 = vld [vmem:[#allocation6 + $0x30] sm:$0xff]  ;;  %v1378_v62 = vld [vmem:[#allocation6 + $0x138] sm:$0xff]  ;;  %v1363_v28 = vld [vmem:[#allocation6 + $0xc0] sm:$0xff] }
 0x1bd   : > { %vm1565_vm5 = vcmp.ge.f32.partialorder %v1501_v7, 0.0  ;;  %vm1566_vm7 = vcmp.ge.f32.partialorder %v1502_v49, 0.0  ;;  %v1629_v47 = vmul.f32 0.2, %v1501_v7  ;;  %v2646_v3 = vpack.c.bf16 %v1708_v22, %v1707_v52 }
 0x1be   : > { %v1630_v23 = vmul.f32 0.2, %v1502_v49  ;;  %v1534_v26 = vadd.f32 %v3508_v14, %v1463_v50  ;;  %vm1597_vm8 = vcmp.ge.f32.partialorder %v1533_v54, 0.0  ;;  %v1661_v15 = vmul.f32 0.2, %v1533_v54  ;;  %v1364_v50 = vld [vmem:[#allocation6 + $0xc8] sm:$0xff] }
 0x1bf   : > { %v1693_v63 = vsel %vm1565_vm5, %v1501_v7, %v1629_v47  ;;  %v1485_v29 = vadd.f32 %v3508_v14, %v1414_v55  ;;  %v1486_v0 = vadd.f32 %v3508_v14, %v1415_v58  ;;  %2648 = vmatpush3.bf16.xpose.msk.msra.mxu1 %vm3523_vm6, %v2646_v3  ;;  %v1446_v6 = vmul.f32 %v3504_v24, %v1375_v59 }
 0x1c0   : > { %v1694_v42 = vsel %vm1566_vm7, %v1502_v49, %v1630_v23  ;;  %vm1598_vm9 = vcmp.ge.f32.partialorder %v1534_v26, 0.0  ;;  %v1662_v1 = vmul.f32 0.2, %v1534_v26  ;;  %v1725_v40 = vsel %vm1597_vm8, %v1533_v54, %v1661_v15 }
 0x1c1   : > { %v2601_v19 = vpack.c.bf16 %v1694_v42, %v1693_v63  ;;  %vm1549_vm10 = vcmp.ge.f32.partialorder %v1485_v29, 0.0  ;;  %vm1550_vm11 = vcmp.ge.f32.partialorder %v1486_v0, 0.0  ;;  %v1613_v13 = vmul.f32 0.2, %v1485_v29 }
 0x1c2   : > { %v1726_v12 = vsel %vm1598_vm9, %v1534_v26, %v1662_v1  ;;  %v1614_v61 = vmul.f32 0.2, %v1486_v0  ;;  %v1447_v25 = vmul.f32 %v3504_v24, %v1376_v2  ;;  %v1517_v17 = vadd.f32 %v3508_v14, %v1446_v6 }
 0x1c3   : > { %2603 = vmatprep.subr.msk.bf16.mxu0 %vm3523_vm6, %v2601_v19  ;;  %v2649_v43 = vpack.c.bf16 %v1726_v12, %v1725_v40  ;;  %v1432_v20 = vmul.f32 %v3504_v24, %v1361_v8  ;;  %v1433_v35 = vmul.f32 %v3504_v24, %v1362_v10  ;;  %v1677_v21 = vsel %vm1549_vm10, %v1485_v29, %v1613_v13  ;;  %v1395_v19 = vld [vmem:[#allocation6 + $0x1c0] sm:$0xff]  ;;  %v1396_v40 = vld [vmem:[#allocation6 + $0x1c8] sm:$0xff] }
 0x1c4   : > { %v1678_v16 = vsel %vm1550_vm11, %v1486_v0, %v1614_v61  ;;  %v1518_v46 = vadd.f32 %v3508_v14, %v1447_v25  ;;  %v1464_v27 = vmul.f32 %v3504_v24, %v1393_v11  ;;  %vm1581_vm12 = vcmp.ge.f32.partialorder %v1517_v17, 0.0  ;;  %v1347_v61 = vld [vmem:[#allocation6 + $0x40] sm:$0xff]  ;;  %v1348_v25 = vld [vmem:[#allocation6 + $0x48] sm:$0xff] }
 0x1c5   : > { %2651 = vmatprep.subr.msk.bf16.mxu1 %vm3523_vm6, %v2649_v43  ;;  %v2604_v30 = vpack.c.bf16 %v1678_v16, %v1677_v21  ;;  %v1645_v31 = vmul.f32 0.2, %v1517_v17  ;;  %v1503_v33 = vadd.f32 %v3508_v14, %v1432_v20  ;;  %v1504_v57 = vadd.f32 %v3508_v14, %v1433_v35  ;;  %v1379_v43 = vld [vmem:[#allocation6 + $0x140] sm:$0xff] }
 0x1c6   : > { %vm1582_vm13 = vcmp.ge.f32.partialorder %v1518_v46, 0.0  ;;  %v1646_v39 = vmul.f32 0.2, %v1518_v46  ;;  %v1465_v34 = vmul.f32 %v3504_v24, %v1394_v56  ;;  %v1535_v5 = vadd.f32 %v3508_v14, %v1464_v27  ;;  %v1380_v56 = vld [vmem:[#allocation6 + $0x148] sm:$0xff] }
 0x1c7   : > { %2606 = vmatpush3.bf16.xpose.msk.msra.mxu0 %vm3523_vm6, %v2604_v30  ;;  %v1709_v51 = vsel %vm1581_vm12, %v1517_v17, %v1645_v31  ;;  %vm1567_vm14 = vcmp.ge.f32.partialorder %v1503_v33, 0.0  ;;  %v1631_v38 = vmul.f32 0.2, %v1503_v33  ;;  %vm1568_vm15 = vcmp.ge.f32.partialorder %v1504_v57, 0.0  ;;  %v1365_v30 = vld [vmem:[#allocation6 + $0xd0] sm:$0xff] }
 0x1c8   : > { %v1710_v36 = vsel %vm1582_vm13, %v1518_v46, %v1646_v39  ;;  %v1632_v37 = vmul.f32 0.2, %v1504_v57  ;;  %v1536_v41 = vadd.f32 %v3508_v14, %v1465_v34  ;;  %vm1599_vm0 = vcmp.ge.f32.partialorder %v1535_v5, 0.0 }
 0x1c9   : > { %v2652_v48 = vpack.c.bf16 %v1710_v36, %v1709_v51  ;;  %v1695_v53 = vsel %vm1567_vm14, %v1503_v33, %v1631_v38  ;;  %v1663_v4 = vmul.f32 0.2, %v1535_v5  ;;  %v1416_v49 = vmul.f32 %v3504_v24, %v1345_v9 }
 0x1ca   : > { %v1696_v32 = vsel %vm1568_vm15, %v1504_v57, %v1632_v37  ;;  %vm1600_vm1 = vcmp.ge.f32.partialorder %v1536_v41, 0.0  ;;  %v1664_v7 = vmul.f32 0.2, %v1536_v41  ;;  %v1417_v55 = vmul.f32 %v3504_v24, %v1346_v18 }
 0x1cb   : > { %2654 = vmatpush3.bf16.xpose.msk.msra.mxu1 %vm3523_vm6, %v2652_v48  ;;  %v2607_v52 = vpack.c.bf16 %v1696_v32, %v1695_v53  ;;  %v1727_v54 = vsel %vm1599_vm0, %v1535_v5, %v1663_v4  ;;  %v1448_v58 = vmul.f32 %v3504_v24, %v1377_v45  ;;  %v1487_v22 = vadd.f32 %v3508_v14, %v1416_v49  ;;  %v1398_v49 = vld [vmem:[#allocation6 + $0x1d8] sm:$0xff] }
 0x1cc   : > { %v1728_v59 = vsel %vm1600_vm1, %v1536_v41, %v1664_v7  ;;  %v1449_v47 = vmul.f32 %v3504_v24, %v1378_v62  ;;  %v1434_v3 = vmul.f32 %v3504_v24, %v1363_v28  ;;  %v1488_v26 = vadd.f32 %v3508_v14, %v1417_v55  ;;  %v1366_v41 = vld [vmem:[#allocation6 + $0xd8] sm:$0xff]  ;;  %v1397_v7 = vld [vmem:[#allocation6 + $0x1d0] sm:$0xff] }
 0x1cd   : > { %2609 = vmatprep.subr.msk.bf16.mxu0 %vm3523_vm6, %v2607_v52  ;;  %v2655_v23 = vpack.c.bf16 %v1728_v59, %v1727_v54  ;;  %v1519_v63 = vadd.f32 %v3508_v14, %v1448_v58  ;;  %v1435_v15 = vmul.f32 %v3504_v24, %v1364_v50  ;;  %vm1551_vm3 = vcmp.ge.f32.partialorder %v1487_v22, 0.0  ;;  %v1349_v58 = vld [vmem:[#allocation6 + $0x50] sm:$0xff]  ;;  %v1350_v59 = vld [vmem:[#allocation6 + $0x58] sm:$0xff] }
 0x1ce   : > { %v1615_v29 = vmul.f32 0.2, %v1487_v22  ;;  %v1520_v0 = vadd.f32 %v3508_v14, %v1449_v47  ;;  %v1505_v2 = vadd.f32 %v3508_v14, %v1434_v3  ;;  %vm1552_vm4 = vcmp.ge.f32.partialorder %v1488_v26, 0.0 }
 0x1cf   : > { %2657 = vmatprep.subr.msk.bf16.mxu1 %vm3523_vm6, %v2655_v23  ;;  %v1616_v42 = vmul.f32 0.2, %v1488_v26  ;;  %vm1583_vm5 = vcmp.ge.f32.partialorder %v1519_v63, 0.0  ;;  %v1647_v1 = vmul.f32 0.2, %v1519_v63  ;;  %v1506_v10 = vadd.f32 %v3508_v14, %v1435_v15 }
 0x1d0   : > { %v1679_v6 = vsel %vm1551_vm3, %v1487_v22, %v1615_v29  ;;  %vm1584_vm7 = vcmp.ge.f32.partialorder %v1520_v0, 0.0  ;;  %v1648_v8 = vmul.f32 0.2, %v1520_v0  ;;  %vm1569_vm8 = vcmp.ge.f32.partialorder %v1505_v2, 0.0 }
 0x1d1   : > { %v1680_v11 = vsel %vm1552_vm4, %v1488_v26, %v1616_v42  ;;  %v1711_v12 = vsel %vm1583_vm5, %v1519_v63, %v1647_v1  ;;  %v1633_v13 = vmul.f32 0.2, %v1505_v2  ;;  %vm1570_vm9 = vcmp.ge.f32.partialorder %v1506_v10, 0.0 }
 0x1d2   : > { %v2610_v17 = vpack.c.bf16 %v1680_v11, %v1679_v6  ;;  %v1712_v20 = vsel %vm1584_vm7, %v1520_v0, %v1648_v8  ;;  %v1634_v35 = vmul.f32 0.2, %v1506_v10  ;;  %v1466_v46 = vmul.f32 %v3504_v24, %v1395_v19 }
 0x1d3   : > { %v2658_v21 = vpack.c.bf16 %v1712_v20, %v1711_v12  ;;  %v1697_v16 = vsel %vm1569_vm8, %v1505_v2, %v1633_v13  ;;  %v1467_v27 = vmul.f32 %v3504_v24, %v1396_v40  ;;  %v1418_v33 = vmul.f32 %v3504_v24, %v1347_v61  ;;  %v1381_v61 = vld [vmem:[#allocation6 + $0x150] sm:$0xff]  ;;  %v1367_v20 = vld [vmem:[#allocation6 + $0xe0] sm:$0xff] }
 0x1d4   : > { %2612 = vmatpush3.bf16.xpose.msk.msra.mxu0 %vm3523_vm6, %v2610_v17  ;;  %v1698_v31 = vsel %vm1570_vm9, %v1506_v10, %v1634_v35  ;;  %v1419_v39 = vmul.f32 %v3504_v24, %v1348_v25  ;;  %v1450_v57 = vmul.f32 %v3504_v24, %v1379_v43  ;;  %v1537_v51 = vadd.f32 %v3508_v14, %v1466_v46  ;;  %v1382_v25 = vld [vmem:[#allocation6 + $0x158] sm:$0xff]  ;;  %v1368_v35 = vld [vmem:[#allocation6 + $0xe8] sm:$0xff]  ;;  %v1399_v46 = vld [vmem:[#allocation6 + $0x1e0] sm:$0xff] }
 0x1d5   : > { %2660 = vmatpush3.bf16.xpose.msk.msra.mxu1 %vm3523_vm6, %v2658_v21  ;;  %v2613_v34 = vpack.c.bf16 %v1698_v31, %v1697_v16  ;;  %v1538_v38 = vadd.f32 %v3508_v14, %v1467_v27  ;;  %v1451_v5 = vmul.f32 %v3504_v24, %v1380_v56  ;;  %v1489_v9 = vadd.f32 %v3508_v14, %v1418_v33 }
 0x1d6   : > { %v1490_v36 = vadd.f32 %v3508_v14, %v1419_v39  ;;  %v1521_v37 = vadd.f32 %v3508_v14, %v1450_v57  ;;  %v1436_v18 = vmul.f32 %v3504_v24, %v1365_v30  ;;  %vm1601_vm10 = vcmp.ge.f32.partialorder %v1537_v51, 0.0  ;;  %v1400_v39 = vld [vmem:[#allocation6 + $0x1e8] sm:$0xff] }
 0x1d7   : > { %2615 = vmatprep.subr.msk.bf16.mxu0 %vm3523_vm6, %v2613_v34  ;;  %vm1602_vm11 = vcmp.ge.f32.partialorder %v1538_v38, 0.0  ;;  %v1665_v45 = vmul.f32 0.2, %v1537_v51  ;;  %v1666_v48 = vmul.f32 0.2, %v1538_v38  ;;  %vm1553_vm12 = vcmp.ge.f32.partialorder %v1489_v9, 0.0 }
 0x1d8   : > { %vm1554_vm13 = vcmp.ge.f32.partialorder %v1490_v36, 0.0  ;;  %v1617_v53 = vmul.f32 0.2, %v1489_v9  ;;  %v1618_v4 = vmul.f32 0.2, %v1490_v36  ;;  %v1522_v32 = vadd.f32 %v3508_v14, %v1451_v5 }
 0x1d9   : > { %v1729_v62 = vsel %vm1601_vm10, %v1537_v51, %v1665_v45  ;;  %v1730_v28 = vsel %vm1602_vm11, %v1538_v38, %v1666_v48  ;;  %vm1585_vm14 = vcmp.ge.f32.partialorder %v1521_v37, 0.0  ;;  %v1649_v55 = vmul.f32 0.2, %v1521_v37 }
 0x1da   : > { %v2661_v50 = vpack.c.bf16 %v1730_v28, %v1729_v62  ;;  %v1681_v52 = vsel %vm1553_vm12, %v1489_v9, %v1617_v53  ;;  %v1682_v54 = vsel %vm1554_vm13, %v1490_v36, %v1618_v4  ;;  %vm1586_vm15 = vcmp.ge.f32.partialorder %v1522_v32, 0.0  ;;  %v1351_v53 = vld [vmem:[#allocation6 + $0x60] sm:$0xff] }
 0x1db   : > { %v2616_v22 = vpack.c.bf16 %v1682_v54, %v1681_v52  ;;  %v1650_v47 = vmul.f32 0.2, %v1522_v32  ;;  %v1437_v3 = vmul.f32 %v3504_v24, %v1366_v41  ;;  %v1713_v23 = vsel %vm1585_vm14, %v1521_v37, %v1649_v55  ;;  %v1352_v54 = vld [vmem:[#allocation6 + $0x68] sm:$0xff]  ;;  %v1383_v55 = vld [vmem:[#allocation6 + $0x160] sm:$0xff] }
 0x1dc   : > { %2663 = vmatprep.subr.msk.bf16.mxu1 %vm3523_vm6, %v2661_v50  ;;  %v1507_v26 = vadd.f32 %v3508_v14, %v1436_v18  ;;  %v1468_v63 = vmul.f32 %v3504_v24, %v1397_v7  ;;  %v1469_v15 = vmul.f32 %v3504_v24, %v1398_v49  ;;  %v1420_v2 = vmul.f32 %v3504_v24, %v1349_v58 }
 0x1dd   : > { %2618 = vmatpush3.bf16.xpose.msk.msra.mxu0 %vm3523_vm6, %v2616_v22  ;;  %v1714_v29 = vsel %vm1586_vm15, %v1522_v32, %v1650_v47  ;;  %v1508_v0 = vadd.f32 %v3508_v14, %v1437_v3  ;;  %v1421_v42 = vmul.f32 %v3504_v24, %v1350_v59  ;;  %v1452_v31 = vmul.f32 %v3504_v24, %v1381_v61  ;;  %v1384_v3 = vld [vmem:[#allocation6 + $0x168] sm:$0xff] }
 0x1de   : > { %v2664_v1 = vpack.c.bf16 %v1714_v29, %v1713_v23  ;;  %vm1571_vm0 = vcmp.ge.f32.partialorder %v1507_v26, 0.0  ;;  %v1635_v6 = vmul.f32 0.2, %v1507_v26  ;;  %v1539_v8 = vadd.f32 %v3508_v14, %v1468_v63  ;;  %v1369_v23 = vld [vmem:[#allocation6 + $0xf0] sm:$0xff] }
 0x1df   : > { %vm1572_vm1 = vcmp.ge.f32.partialorder %v1508_v0, 0.0  ;;  %v1636_v10 = vmul.f32 0.2, %v1508_v0  ;;  %v1540_v19 = vadd.f32 %v3508_v14, %v1469_v15  ;;  %v1491_v40 = vadd.f32 %v3508_v14, %v1420_v2 }
 0x1e0   : > { %2666 = vmatpush3.bf16.xpose.msk.msra.mxu1 %vm3523_vm6, %v2664_v1  ;;  %v1699_v11 = vsel %vm1571_vm0, %v1507_v26, %v1635_v6  ;;  %vm1603_vm3 = vcmp.ge.f32.partialorder %v1539_v8, 0.0  ;;  %v1667_v12 = vmul.f32 0.2, %v1539_v8  ;;  %v1492_v13 = vadd.f32 %v3508_v14, %v1421_v42  ;;  %v1370_v26 = vld [vmem:[#allocation6 + $0xf8] sm:$0xff] }
 0x1e1   : > { %v1700_v43 = vsel %vm1572_vm1, %v1508_v0, %v1636_v10  ;;  %vm1604_vm4 = vcmp.ge.f32.partialorder %v1540_v19, 0.0  ;;  %v1668_v17 = vmul.f32 0.2, %v1540_v19  ;;  %vm1555_vm5 = vcmp.ge.f32.partialorder %v1491_v40, 0.0 }
 0x1e2   : > { %v2619_v56 = vpack.c.bf16 %v1700_v43, %v1699_v11  ;;  %v1731_v21 = vsel %vm1603_vm3, %v1539_v8, %v1667_v12  ;;  %vm1556_vm7 = vcmp.ge.f32.partialorder %v1492_v13, 0.0  ;;  %v1619_v16 = vmul.f32 0.2, %v1491_v40 }
 0x1e3   : > { %v1732_v27 = vsel %vm1604_vm4, %v1540_v19, %v1668_v17  ;;  %v1620_v30 = vmul.f32 0.2, %v1492_v13  ;;  %v1453_v33 = vmul.f32 %v3504_v24, %v1382_v25  ;;  %v1438_v51 = vmul.f32 %v3504_v24, %v1367_v20 }
 0x1e4   : > { %2621 = vmatprep.subr.msk.bf16.mxu0 %vm3523_vm6, %v2619_v56  ;;  %v2667_v57 = vpack.c.bf16 %v1732_v27, %v1731_v21  ;;  %v1683_v34 = vsel %vm1555_vm5, %v1491_v40, %v1619_v16  ;;  %v1439_v38 = vmul.f32 %v3504_v24, %v1368_v35  ;;  %v1523_v9 = vadd.f32 %v3508_v14, %v1452_v31  ;;  %v1401_v35 = vld [vmem:[#allocation6 + $0x1f0] sm:$0xff]  ;;  %v1402_v56 = vld [vmem:[#allocation6 + $0x1f8] sm:$0xff] }
 0x1e5   : > { %v1684_v5 = vsel %vm1556_vm7, %v1492_v13, %v1620_v30  ;;  %v1524_v36 = vadd.f32 %v3508_v14, %v1453_v33  ;;  %v1470_v37 = vmul.f32 %v3504_v24, %v1399_v46  ;;  %v1509_v18 = vadd.f32 %v3508_v14, %v1438_v51  ;;  %v1353_v21 = vld [vmem:[#allocation6 + $0x70] sm:$0xff]  ;;  %v1354_v31 = vld [vmem:[#allocation6 + $0x78] sm:$0xff] }
 0x1e6   : > { %2669 = vmatprep.subr.msk.bf16.mxu1 %vm3523_vm6, %v2667_v57  ;;  %v2622_v41 = vpack.c.bf16 %v1684_v5, %v1683_v34  ;;  %v1510_v45 = vadd.f32 %v3508_v14, %v1439_v38  ;;  %v1471_v48 = vmul.f32 %v3504_v24, %v1400_v39  ;;  %vm1587_vm8 = vcmp.ge.f32.partialorder %v1523_v9, 0.0  ;;  %v1385_v33 = vld [vmem:[#allocation6 + $0x170] sm:$0xff]  ;;  %v1386_v38 = vld [vmem:[#allocation6 + $0x178] sm:$0xff] }
 0x1e7   : > { %vm1588_vm9 = vcmp.ge.f32.partialorder %v1524_v36, 0.0  ;;  %v1651_v4 = vmul.f32 0.2, %v1523_v9  ;;  %v1652_v62 = vmul.f32 0.2, %v1524_v36  ;;  %vm1573_vm10 = vcmp.ge.f32.partialorder %v1509_v18, 0.0 }
 0x1e8   : > { %2624 = vmatpush3.bf16.xpose.msk.msra.mxu0 %vm3523_vm6, %v2622_v41  ;;  %vm1574_vm11 = vcmp.ge.f32.partialorder %v1510_v45, 0.0  ;;  %v1637_v28 = vmul.f32 0.2, %v1509_v18  ;;  %v1638_v32 = vmul.f32 0.2, %v1510_v45  ;;  %v1541_v50 = vadd.f32 %v3508_v14, %v1470_v37 }
 0x1e9   : > { %v1715_v7 = vsel %vm1587_vm8, %v1523_v9, %v1651_v4  ;;  %v1716_v49 = vsel %vm1588_vm9, %v1524_v36, %v1652_v62  ;;  %v1542_v52 = vadd.f32 %v3508_v14, %v1471_v48  ;;  %v1422_v47 = vmul.f32 %v3504_v24, %v1351_v53 }
 0x1ea   : > { %v2670_v58 = vpack.c.bf16 %v1716_v49, %v1715_v7  ;;  %v1701_v59 = vsel %vm1573_vm10, %v1509_v18, %v1637_v28  ;;  %v1702_v22 = vsel %vm1574_vm11, %v1510_v45, %v1638_v32  ;;  %vm1605_vm12 = vcmp.ge.f32.partialorder %v1541_v50, 0.0 }
 0x1eb   : > { %v2625_v63 = vpack.c.bf16 %v1702_v22, %v1701_v59  ;;  %vm1606_vm13 = vcmp.ge.f32.partialorder %v1542_v52, 0.0  ;;  %v1669_v15 = vmul.f32 0.2, %v1541_v50  ;;  %v1670_v29 = vmul.f32 0.2, %v1542_v52 }
 0x1ec   : > { %2672 = vmatpush3.bf16.xpose.msk.msra.mxu1 %vm3523_vm6, %v2670_v58  ;;  %v1423_v0 = vmul.f32 %v3504_v24, %v1352_v54  ;;  %v1493_v2 = vadd.f32 %v3508_v14, %v1422_v47  ;;  %v1454_v42 = vmul.f32 %v3504_v24, %v1383_v55  ;;  %v1455_v6 = vmul.f32 %v3504_v24, %v1384_v3 }
 0x1ed   : > { %2627 = vmatprep.subr.msk.bf16.mxu0 %vm3523_vm6, %v2625_v63  ;;  %v1733_v1 = vsel %vm1605_vm12, %v1541_v50, %v1669_v15  ;;  %v1440_v8 = vmul.f32 %v3504_v24, %v1369_v23  ;;  %v1441_v10 = vmul.f32 %v3504_v24, %v1370_v26  ;;  %v1734_v19 = vsel %vm1606_vm13, %v1542_v52, %v1670_v29 }
 0x1ee   : > { %v1494_v40 = vadd.f32 %v3508_v14, %v1423_v0  ;;  %vm1557_vm14 = vcmp.ge.f32.partialorder %v1493_v2, 0.0  ;;  %v1621_v11 = vmul.f32 0.2, %v1493_v2  ;;  %v2673_v12 = vpack.c.bf16 %v1734_v19, %v1733_v1 }
 0x1ef   : > { %v1525_v13 = vadd.f32 %v3508_v14, %v1454_v42  ;;  %v1526_v61 = vadd.f32 %v3508_v14, %v1455_v6  ;;  %v1511_v25 = vadd.f32 %v3508_v14, %v1440_v8  ;;  %v1512_v20 = vadd.f32 %v3508_v14, %v1441_v10 }
 0x1f0   : > { %vm1558_vm15 = vcmp.ge.f32.partialorder %v1494_v40, 0.0  ;;  %v1622_v43 = vmul.f32 0.2, %v1494_v40  ;;  %v1685_v17 = vsel %vm1557_vm14, %v1493_v2, %v1621_v11  ;;  %2675 = vmatprep.subr.msk.bf16.mxu1 %vm3523_vm6, %v2673_v12  ;;  %v1472_v36 = vmul.f32 %v3504_v24, %v1401_v35 }
 0x1f1   : > { %vm1589_vm0 = vcmp.ge.f32.partialorder %v1525_v13, 0.0  ;;  %vm1590_vm1 = vcmp.ge.f32.partialorder %v1526_v61, 0.0  ;;  %v1653_v16 = vmul.f32 0.2, %v1525_v13  ;;  %v1654_v46 = vmul.f32 0.2, %v1526_v61 }
 0x1f2   : > { %v1686_v27 = vsel %vm1558_vm15, %v1494_v40, %v1622_v43  ;;  %vm1575_vm3 = vcmp.ge.f32.partialorder %v1511_v25, 0.0  ;;  %vm1576_vm4 = vcmp.ge.f32.partialorder %v1512_v20, 0.0  ;;  %v1639_v30 = vmul.f32 0.2, %v1511_v25 }
 0x1f3   : > { %v2628_v39 = vpack.c.bf16 %v1686_v27, %v1685_v17  ;;  %v1717_v57 = vsel %vm1589_vm0, %v1525_v13, %v1653_v16  ;;  %v1718_v34 = vsel %vm1590_vm1, %v1526_v61, %v1654_v46  ;;  %v1640_v51 = vmul.f32 0.2, %v1512_v20 }
 0x1f4   : > { %v2676_v5 = vpack.c.bf16 %v1718_v34, %v1717_v57  ;;  %v1703_v9 = vsel %vm1575_vm3, %v1511_v25, %v1639_v30  ;;  %v1473_v37 = vmul.f32 %v3504_v24, %v1402_v56  ;;  %v1424_v18 = vmul.f32 %v3504_v24, %v1353_v21 }
 0x1f5   : > { %2630 = vmatpush3.bf16.xpose.msk.msra.mxu0 %vm3523_vm6, %v2628_v39  ;;  %v1704_v41 = vsel %vm1576_vm4, %v1512_v20, %v1640_v51  ;;  %v1425_v45 = vmul.f32 %v3504_v24, %v1354_v31  ;;  %v1456_v48 = vmul.f32 %v3504_v24, %v1385_v33  ;;  %v1543_v4 = vadd.f32 %v3508_v14, %v1472_v36 }
 0x1f6   : > { %2678 = vmatpush3.bf16.xpose.msk.msra.mxu1 %vm3523_vm6, %v2676_v5  ;;  %v2631_v53 = vpack.c.bf16 %v1704_v41, %v1703_v9  ;;  %v1544_v62 = vadd.f32 %v3508_v14, %v1473_v37  ;;  %v1457_v28 = vmul.f32 %v3504_v24, %v1386_v38  ;;  %v1495_v32 = vadd.f32 %v3508_v14, %v1424_v18 }
 0x1f7   : > { %v1496_v7 = vadd.f32 %v3508_v14, %v1425_v45  ;;  %v1527_v49 = vadd.f32 %v3508_v14, %v1456_v48  ;;  %vm1607_vm5 = vcmp.ge.f32.partialorder %v1543_v4, 0.0  ;;  %v1671_v50 = vmul.f32 0.2, %v1543_v4 }
 0x1f8   : > { %2633 = vmatprep.subr.msk.bf16.mxu0 %vm3523_vm6, %v2631_v53  ;;  %vm1608_vm7 = vcmp.ge.f32.partialorder %v1544_v62, 0.0  ;;  %v1672_v52 = vmul.f32 0.2, %v1544_v62  ;;  %vm1559_vm8 = vcmp.ge.f32.partialorder %v1495_v32, 0.0  ;;  %v1623_v54 = vmul.f32 0.2, %v1495_v32 }
 0x1f9   : > { %vm1560_vm9 = vcmp.ge.f32.partialorder %v1496_v7, 0.0  ;;  %v1624_v55 = vmul.f32 0.2, %v1496_v7  ;;  %v1735_v58 = vsel %vm1607_vm5, %v1543_v4, %v1671_v50  ;;  %v1528_v24 = vadd.f32 %v3508_v14, %v1457_v28 }
 0x1fa   : > { %v1736_v59 = vsel %vm1608_vm7, %v1544_v62, %v1672_v52  ;;  %vm1591_vm10 = vcmp.ge.f32.partialorder %v1527_v49, 0.0  ;;  %v1687_v47 = vsel %vm1559_vm8, %v1495_v32, %v1623_v54  ;;  %v1655_v23 = vmul.f32 0.2, %v1527_v49 }
 0x1fb   : > { %v2679_v22 = vpack.c.bf16 %v1736_v59, %v1735_v58  ;;  %v1688_v3 = vsel %vm1560_vm9, %v1496_v7, %v1624_v55  ;;  %vm1592_vm11 = vcmp.ge.f32.partialorder %v1528_v24, 0.0  ;;  %v1656_v63 = vmul.f32 0.2, %v1528_v24 }
 0x1fc   : > { %v2634_v26 = vpack.c.bf16 %v1688_v3, %v1687_v47  ;;  %v1719_v15 = vsel %vm1591_vm10, %v1527_v49, %v1655_v23  ;;  %v2784_v14 = vmov 1966171168   ;;  %v2085_v42 = vlaneseq }
 0x1fd   : > { %2681 = vmatprep.subr.msk.bf16.mxu1 %vm3523_vm6, %v2679_v22  ;;  %v1720_v29 = vsel %vm1592_vm11, %v1528_v24, %v1656_v63  ;;  %v2083_v2 = vunpack.c.l.s4 %v2784_v14 }
 0x1fe   : > { %2636 = vmatpush3.bf16.xpose.msk.msra.mxu0 %vm3523_vm6, %v2634_v26  ;;  %v2682_v0 = vpack.c.bf16 %v1720_v29, %v1719_v15  ;;  %v2086_v6 = vshrl.u32 %v2085_v42, 7 }
 0x1ff   : > { %v2084_v1 = vunpack.c.0.s8 %v2083_v2 }
 0x200   : > { %2684 = vmatpush3.bf16.xpose.msk.msra.mxu1 %vm3523_vm6, %v2682_v0  ;;  %vm2107_vm6 = vcmp.lt.s32.totalorder %v2085_v42, 512 }
 0x201   : > { %v2087_v19 = vsub.s32 %v2084_v1, %v2086_v6 }
 0x205   : > { %2442 = vmatmul.mubr.msk.f32.vlgmr.msra.gmra.mrb[0].mxu0 %vm1738_vm2, %v3572_v60 }
 0x207   : > { %2476 = vmatmul.mubr.msk.f32.vlgmr.msra.gmra.mrb[0].mxu1 %vm1738_vm2, %v3572_v60 }
 0x2d8   : > { %v2000_v8 = vpop.f32.mrb[0].mxu0 }
 0x2d9   : > { %v2002_v10 = vpop.f32.mrb[1].mxu0 }
 0x2da   : > { %v2080_v40 = vcombine.low %v2000_v8, %v2002_v10  ;;  %v2071_v11 = vpop.f32.mrb[0].mxu1 }
 0x2db   : > { %v2073_v12 = vpop.f32.mrb[1].mxu1 }
 0x2dc   : > { %v2088_v13 = vrot.slane %v2080_v40, %v2087_v19  ;;  %v2081_v44 = vcombine.low %v2071_v11, %v2073_v12 }
 0x2de   : > { %v2095_v61 = vrot.slane %v2081_v44, %v2087_v19 }
 0x2e0   : > { %v2096_v25 = vcombine.low %v2088_v13, %v2095_v61 }
 0x2e2   : > { %v2103_v43 = vrot.slane %v2096_v25, %v2087_v19 }
 0x2e4   : > { %2109 = vst.msk [vmem:[#allocation7] sm:$0xf] %vm2107_vm6, %v2103_v43 }
 0x2e5 PF: > { %p3722_p6 = scmp.eq.s32.totalorder %s2197_s21, 1  ;;  %s2785_s8 = smov [#allocation7]  }
 0x2e6   : > { %s2126_s9 = sshll.u32 %s2785_s8, 4  ;;  %s2127_s9 = int_to_ptr.vmem [resolvable:$true] %s2126_s9 }
 0x2e7   : > { %s2729_s10 = scalar_lea.vmem %s2127_s9, 64  ;;  %s2735_s11 = scalar_lea.vmem %s2127_s9, 128 }
 0x2e8   : > { %p2730_p7 = scmp.ne.s32.totalorder %s2127_s9, %s2729_s10  ;;  %p2736_p10 = scmp.lt.s32.totalorder %s2127_s9, %s2127_s9 }
 0x2e9   : > { %p2737_p11 = scmp.lt.s32.totalorder %s2735_s11, %s2729_s10 }
 0x2ea   : > { %p2731_p8 = pnand %p2730_p7, %p3722_p6 }
 0x2eb   : > { %p2738_p12 = por %p2737_p11, %p2736_p10 }
 0x2ec   : > { %p2732_p9 = pneg %p2731_p8 }
 0x2ee   : > { %p2739_p13 = pnand %p2738_p12, %p2732_p9 }
 0x2f0   : > { %2742 = shalt.err (!%p2739_p13)
}
 0x2f1   : > { %s2743_s13 = scalar_lea.hbm %s3761_s5, 64 }
 0x2f2   : > { %p2744_p0 = scmp.ne.s32.totalorder %s3761_s5, %s2743_s13  ;;  %p2749_p3 = scmp.lt.u32.totalorder %s2743_s13, %s3761_s5 }
 0x2f4   : > { %p2745_p1 = pnand %p2744_p0, %p3722_p6 }
 0x2f6   : > { %p2746_p2 = pneg %p2745_p1 }
 0x2f8   : > { %p2751_p4 = pnand %p2749_p3, %p2746_p2 }
 0x2fa   : > { %2754 = shalt.err (!%p2751_p4)
}
 0x2fb   : > { %2690 = dma.vmem_to_hbm [thread:$0]  (%p3722_p6), %s2127_s9, 64, %s3761_s5, [#allocation8]  }
 0x2fc PF: > { %p2698_p5 = scmp.ge.s32.totalorder %s2781_s20, 2  ;;  %p2699_p7 = scmp.eq.s32.totalorder %s2198_s22, 1 }
 0x2fe   : > { %p2694_p8 = pnand %p2699_p7, %p2698_p5 }
 0x300   : > { %2768 = dma.done.wait (!%p2694_p8), [#allocation8], 64  }
 0x301   : > { %2770 = vsyncadd (!%p2694_p8), [#allocation8], 4294967232  ;;  %s18_s20 = sadd.s32 1, %s2781_s20   ;;  %s3765_s18 = smov %s2777_s19 }
 0x302   : > { %p15_p9 = scmp.ge.s32.totalorder %s18_s20, 4   ;;  %s3766_s19 = smov %s3768_s23 }
 0x304   :  { %17 = sbr.rel (!%p15_p9) target bundleno = 3 (0x3), region = 93 }
 0x30b   :  { %2144 = vsyncpa [#allocation8], 1 }
 0x30c   :  { %2146 = vsyncpa [#allocation8 + $0x1], 1 }

</bundles_post_ra>
